<compile_context>
chip_gen: v5e
topology: v5e:2x2
jax: 0.10.0
libtpu: 0.0.40
codegen_flags: <defaults>
</compile_context>

<pallas_src>
import functools

import jax
import jax.numpy as jnp
from jax.experimental import pallas as pl
from jax.experimental.pallas import tpu as pltpu


# Lane offset of the conv interior inside the padded scratch.  A full 128-lane
# tile: interior stores / halo zeroing are unmasked, and the kw==1 (center
# column) slice reads are rotation-free.  Must satisfy W + 1 <= _HALO so the
# zero halo covers every (kh-1)*W + (kw-1) shift of the flattened spatial dim.
_HALO = 128


# ----------------------------------------------------------------------------
# Fused CALayer kernel: one grid step == one batch element, fully VMEM-resident
# ----------------------------------------------------------------------------
def _ca_layer_kernel(H, W, C, Cmid,
                     x_ref,
                     w1_ref, b1_ref, w2_ref, b2_ref,
                     wa_ref, ba_ref, wb_ref, bb_ref,
                     out_ref,
                     pad_scr, patch_scr):
    HW = H * W
    OFF = _HALO

    xv = x_ref[0]                                        # (C, HW) f32, lane-dense

    # W-boundary "keep" masks, built in-kernel (loop-invariant, a few VPU ops).
    wcol = jax.lax.broadcasted_iota(jnp.int32, (1, HW), 1) % W
    mask_l = (wcol != 0).astype(jnp.float32)             # 0.0 where w == 0
    mask_r = (wcol != W - 1).astype(jnp.float32)         # 0.0 where w == W - 1

    # Zero only the two 128-lane halos (aligned, unmasked stores).  The interior
    # is fully overwritten each step.  Scratch persists across grid steps and on
    # v7x each core starts at a different program_id, so this runs EVERY step
    # (do not gate it on program_id == 0).
    halo_zeros = jnp.zeros((C, OFF), jnp.float32)
    pad_scr[:, 0:OFF] = halo_zeros
    pad_scr[:, OFF + HW:OFF + HW + OFF] = halo_zeros

    def conv3x3(w_ref, b_ref):
        # pad_scr[:, OFF:OFF+HW] holds the conv input (flat spatial, zero halo).
        # Store the 9 shifted / edge-masked slices into the (9C, HW) bf16 patch
        # scratch (keeps only one slice live in vregs at a time), then do a
        # single bf16 MXU matmul with f32 accumulation: (C,9C) @ (9C,HW).
        for kh in range(3):
            for kw in range(3):
                k = (kh - 1) * W + (kw - 1)
                sl = pad_scr[:, OFF + k: OFF + k + HW]           # (C, HW) f32
                if kw == 0:
                    sl = sl * mask_l
                elif kw == 2:
                    sl = sl * mask_r
                j = kh * 3 + kw
                patch_scr[j * C:(j + 1) * C, :] = sl.astype(jnp.bfloat16)
        y = jnp.dot(w_ref[...], patch_scr[...],
                    preferred_element_type=jnp.float32)           # (C, HW) f32
        return y + b_ref[...]                                     # bias (C,1)

    # ---- process: conv3x3 -> ReLU -> conv3x3 --------------------------------
    pad_scr[:, OFF:OFF + HW] = xv
    p = jnp.maximum(conv3x3(w1_ref, b1_ref), 0.0)
    pad_scr[:, OFF:OFF + HW] = p
    p = conv3x3(w2_ref, b2_ref)                                   # (C, HW) f32

    # ---- global average pool over spatial (lane reduction) ------------------
    y = jnp.mean(p, axis=1, keepdims=True)                        # (C, 1)

    # ---- conv_du (squeeze/excite), kept column-narrow ------------------------
    # 1x1 #1: wa @ mean(p) == mean(wa @ p)  (linearity), so one tiny f32 matmul
    # with a proper 256-lane N followed by a lane reduce; everything after this
    # point is (.,1) columns — no redundant lane-wide work.
    h = jnp.mean(jnp.dot(wa_ref[...], p, preferred_element_type=jnp.float32),
                 axis=1, keepdims=True) + ba_ref[...]             # (Cmid, 1)
    h = jnp.maximum(h, 0.0)
    # 1x1 #2: unrolled over Cmid (tiny) as column AXPYs -> (C,1) gate logits.
    wb = wb_ref[...]                                              # (C, Cmid)
    zlog = bb_ref[...]                                            # (C, 1)
    for m in range(Cmid):
        zlog = zlog + wb[:, m:m + 1] * h[m:m + 1, :]
    # sigmoid on a single column; reciprocal goes to the (otherwise idle) EUP.
    z = pl.reciprocal(1.0 + jnp.exp(-zlog), approx=True)          # (C, 1)

    # ---- out = z * y + x   (per-channel scalar broadcast over lanes) --------
    out_ref[...] = (xv + z * y).reshape(1, C, HW)


def ca_layer_forward(x_nchw, params):
    """CALayer forward.  x: [B, C, H, W] (NCHW, float32) -> [B, C, H, W]."""
    B, C, H, W = x_nchw.shape
    HW = H * W
    Cmid = params["wa"].shape[0]
    assert W + 1 <= _HALO, "spatial width too large for the fixed 128-lane halo"

    # Lane-dense layout: (B, C, H*W) — a free reshape of NCHW, no transpose.
    x = x_nchw.reshape(B, C, HW)

    kern = functools.partial(_ca_layer_kernel, H, W, C, Cmid)
    # TODO(synk): for large C / H*W, tile spatially with a halo-aware index_map
    # (size tiles for v7x first: 32 MiB scoped / 64 MiB physical VMEM), and on
    # single-TC v5e/v6e fold the whole batch into one grid step to amortize the
    # ~0.35us per-step overhead instead of grid=(B,).
    out = pl.pallas_call(
        kern,
        out_shape=jax.ShapeDtypeStruct((B, C, HW), jnp.float32),
        grid=(B,),
        in_specs=[
            pl.BlockSpec((1, C, HW), lambda b: (b, 0, 0)),     # x
            pl.BlockSpec((C, 9 * C), lambda b: (0, 0)),        # w1 (im2col, bf16)
            pl.BlockSpec((C, 1), lambda b: (0, 0)),            # b1
            pl.BlockSpec((C, 9 * C), lambda b: (0, 0)),        # w2 (im2col, bf16)
            pl.BlockSpec((C, 1), lambda b: (0, 0)),            # b2
            pl.BlockSpec((Cmid, C), lambda b: (0, 0)),         # conv_du w_a
            pl.BlockSpec((Cmid, 1), lambda b: (0, 0)),         # conv_du b_a
            pl.BlockSpec((C, Cmid), lambda b: (0, 0)),         # conv_du w_b
            pl.BlockSpec((C, 1), lambda b: (0, 0)),            # conv_du b_b
        ],
        out_specs=pl.BlockSpec((1, C, HW), lambda b: (b, 0, 0)),
        scratch_shapes=[
            pltpu.VMEM((C, HW + 2 * _HALO), jnp.float32),      # padded conv input
            pltpu.VMEM((9 * C, HW), jnp.bfloat16),             # im2col patch matrix
        ],
        compiler_params=pltpu.CompilerParams(
            dimension_semantics=("parallel",)),                # v7x: 2 TCs split B
    )(x,
      params["w1m"], params["b1c"], params["w2m"], params["b2c"],
      params["wa"], params["bac"], params["wb"], params["bbc"])
    return out.reshape(B, C, H, W)


ca_layer_forward_jit = jax.jit(ca_layer_forward)


# ----------------------------------------------------------------------------
# Pure-JAX reference (matches the PyTorch module) for the correctness check
# ----------------------------------------------------------------------------
def _conv3x3_nchw(x, w, b):
    y = jax.lax.conv_general_dilated(
        x, w, window_strides=(1, 1), padding=((1, 1), (1, 1)),
        dimension_numbers=("NCHW", "OIHW", "NCHW"),
        precision=jax.lax.Precision.HIGHEST)
    return y + b.reshape(1, -1, 1, 1)


def ca_layer_ref(x, params):
    p = _conv3x3_nchw(x, params["w1"], params["b1"])
    p = jnp.maximum(p, 0.0)
    p = _conv3x3_nchw(p, params["w2"], params["b2"])
    y = jnp.mean(p, axis=(2, 3), keepdims=True)                    # (B,C,1,1)
    h = jnp.einsum("mc,bcij->bmij", params["wa"], y,
                   precision=jax.lax.Precision.HIGHEST)
    h = jnp.maximum(h + params["ba"].reshape(1, -1, 1, 1), 0.0)
    z = jnp.einsum("cm,bmij->bcij", params["wb"], h,
                   precision=jax.lax.Precision.HIGHEST)
    z = jax.nn.sigmoid(z + params["bb"].reshape(1, -1, 1, 1))
    return z * y + x


# ----------------------------------------------------------------------------
# Deterministic parameter init (PyTorch OIHW layouts + kernel-side layouts)
# ----------------------------------------------------------------------------
def init_params(key, C, reduction):
    Cmid = C // reduction
    k = jax.random.split(key, 8)
    w1 = jax.random.normal(k[0], (C, C, 3, 3), jnp.float32) * 0.1
    b1 = jax.random.normal(k[1], (C,), jnp.float32) * 0.05
    w2 = jax.random.normal(k[2], (C, C, 3, 3), jnp.float32) * 0.1
    b2 = jax.random.normal(k[3], (C,), jnp.float32) * 0.05
    wa = jax.random.normal(k[4], (Cmid, C), jnp.float32) * 0.1
    ba = jax.random.normal(k[5], (Cmid,), jnp.float32) * 0.05
    wb = jax.random.normal(k[6], (C, Cmid), jnp.float32) * 0.1
    bb = jax.random.normal(k[7], (C,), jnp.float32) * 0.05

    def im2col_w(w):  # OIHW -> (Cout, (kh*3+kw)*Cin + cin)
        return jnp.transpose(w, (0, 2, 3, 1)).reshape(C, 9 * C)

    return dict(
        # reference-side (PyTorch) layouts
        w1=w1, b1=b1, w2=w2, b2=b2, wa=wa, ba=ba, wb=wb, bb=bb,
        # kernel-side layouts: im2col conv weights in bf16 (full-rate MXU path),
        # biases / SE weights stay f32 columns.
        w1m=im2col_w(w1).astype(jnp.bfloat16),
        w2m=im2col_w(w2).astype(jnp.bfloat16),
        b1c=b1.reshape(C, 1), b2c=b2.reshape(C, 1),
        bac=ba.reshape(Cmid, 1), bbc=bb.reshape(C, 1),
    )


if __name__ == "__main__":
    B, C, H, W = 2, 16, 16, 16
    reduction = 4

    key = jax.random.PRNGKey(0)
    kx, kp = jax.random.split(key)
    x = jax.random.normal(kx, (B, C, H, W), jnp.float32)
    params = init_params(kp, C, reduction)

    out = jax.block_until_ready(ca_layer_forward_jit(x, params))
    ref = jax.block_until_ready(ca_layer_ref(x, params))

    assert out.shape == (B, C, H, W), out.shape
    # bf16 conv operands (f32 accumulation) vs the f32-HIGHEST reference; the
    # final output only sees conv error through the spatial mean, so the gap
    # stays well inside this tolerance.
    err = float(jnp.max(jnp.abs(out - ref)))
    assert err < 2e-2, f"max abs error {err}"
    print("KERNEL_OK")
</pallas_src>

<mosaic_0001>
module attributes {stable_mosaic.version = 11 : i64} {
  func.func @_ca_layer_kernel(%arg0: i32, %arg1: memref<1x16x256xf32, #tpu.memory_space<vmem>>, %arg2: memref<16x144xbf16, #tpu.memory_space<vmem>>, %arg3: memref<16x1xf32, #tpu.memory_space<vmem>>, %arg4: memref<16x144xbf16, #tpu.memory_space<vmem>>, %arg5: memref<16x1xf32, #tpu.memory_space<vmem>>, %arg6: memref<4x16xf32, #tpu.memory_space<vmem>>, %arg7: memref<4x1xf32, #tpu.memory_space<vmem>>, %arg8: memref<16x4xf32, #tpu.memory_space<vmem>>, %arg9: memref<16x1xf32, #tpu.memory_space<vmem>>, %arg10: memref<1x16x256xf32, #tpu.memory_space<vmem>>, %arg11: memref<16x512xf32, #tpu.memory_space<vmem>>, %arg12: memref<144x256xbf16, #tpu.memory_space<vmem>>) attributes {dimension_semantics = [#tpu.dimension_semantics<parallel>], iteration_bounds = array<i64: 2>, scalar_prefetch = 0 : i64, scratch_operands = 2 : i64, tpu.core_type = #tpu.core_type<tc>, window_params = [{transform_indices = @transform_0, window_bounds = array<i64: 1, 16, 256>}, {pipeline_mode = #tpu.pipeline_mode<synchronous>, transform_indices = @transform_1, window_bounds = array<i64: 16, 144>}, {pipeline_mode = #tpu.pipeline_mode<synchronous>, transform_indices = @transform_2, window_bounds = array<i64: 16, 1>}, {pipeline_mode = #tpu.pipeline_mode<synchronous>, transform_indices = @transform_3, window_bounds = array<i64: 16, 144>}, {pipeline_mode = #tpu.pipeline_mode<synchronous>, transform_indices = @transform_4, window_bounds = array<i64: 16, 1>}, {pipeline_mode = #tpu.pipeline_mode<synchronous>, transform_indices = @transform_5, window_bounds = array<i64: 4, 16>}, {pipeline_mode = #tpu.pipeline_mode<synchronous>, transform_indices = @transform_6, window_bounds = array<i64: 4, 1>}, {pipeline_mode = #tpu.pipeline_mode<synchronous>, transform_indices = @transform_7, window_bounds = array<i64: 16, 4>}, {pipeline_mode = #tpu.pipeline_mode<synchronous>, transform_indices = @transform_8, window_bounds = array<i64: 16, 1>}, {transform_indices = @transform_9, window_bounds = array<i64: 1, 16, 256>}]} {
    %c0 = arith.constant 0 : index
    %c0_0 = arith.constant 0 : index
    %c0_1 = arith.constant 0 : index
    %0 = vector.load %arg1[%c0, %c0_0, %c0_1] : memref<1x16x256xf32, #tpu.memory_space<vmem>>, vector<1x16x256xf32>
    %1 = vector.shape_cast %0 : vector<1x16x256xf32> to vector<16x256xf32>
    %2 = tpu.iota {dimensions = array<i32: 1>} : vector<1x256xi32>
    %c16_i32 = arith.constant 16 : i32
    %c0_i32 = arith.constant 0 : i32
    %3 = arith.cmpi eq, %c16_i32, %c0_i32 : i32
    %c1_i32 = arith.constant 1 : i32
    %4 = arith.select %3, %c1_i32, %c16_i32 : i32
    %5 = vector.broadcast %4 : i32 to vector<1x256xi32>
    %6 = arith.remsi %2, %5 : vector<1x256xi32>
    %c0_i32_2 = arith.constant 0 : i32
    %7 = vector.broadcast %c0_i32_2 : i32 to vector<1x256xi32>
    %8 = arith.cmpi ne, %6, %7 : vector<1x256xi32>
    %c0_i32_3 = arith.constant 0 : i32
    %9 = vector.broadcast %c0_i32_3 : i32 to vector<1x256xi32>
    %10 = arith.cmpi slt, %6, %9 : vector<1x256xi32>
    %c0_i32_4 = arith.constant 0 : i32
    %11 = arith.cmpi slt, %4, %c0_i32_4 : i32
    %12 = vector.broadcast %11 : i1 to vector<1x256xi1>
    %13 = vector.broadcast %12 : vector<1x256xi1> to vector<1x256xi1>
    %14 = arith.xori %10, %13 : vector<1x256xi1>
    %15 = arith.andi %14, %8 : vector<1x256xi1>
    %16 = vector.broadcast %4 : i32 to vector<1x256xi32>
    %17 = arith.addi %6, %16 : vector<1x256xi32>
    %18 = arith.select %15, %17, %6 : vector<1x256xi1>, vector<1x256xi32>
    %c0_i32_5 = arith.constant 0 : i32
    %19 = vector.broadcast %c0_i32_5 : i32 to vector<1x256xi32>
    %20 = arith.cmpi ne, %18, %19 : vector<1x256xi32>
    %21 = arith.extui %20 : vector<1x256xi1> to vector<1x256xi32>
    %22 = arith.sitofp %21 : vector<1x256xi32> to vector<1x256xf32>
    %c15_i32 = arith.constant 15 : i32
    %23 = vector.broadcast %c15_i32 : i32 to vector<1x256xi32>
    %24 = arith.cmpi ne, %18, %23 : vector<1x256xi32>
    %25 = arith.extui %24 : vector<1x256xi1> to vector<1x256xi32>
    %26 = arith.sitofp %25 : vector<1x256xi32> to vector<1x256xf32>
    %cst = arith.constant 0.000000e+00 : f32
    %27 = vector.broadcast %cst : f32 to vector<16x128xf32>
    %c0_6 = arith.constant 0 : index
    %c0_7 = arith.constant 0 : index
    %28 = vector.load %arg11[%c0_6, %c0_7] : memref<16x512xf32, #tpu.memory_space<vmem>>, vector<16x128xf32>
    tpu.vector_store %arg11[%c0_6, %c0_7], %27 {strides = array<i32>} : memref<16x512xf32, #tpu.memory_space<vmem>>, vector<16x128xf32>,
    %c0_8 = arith.constant 0 : index
    %c384 = arith.constant 384 : index
    %29 = vector.load %arg11[%c0_8, %c384] : memref<16x512xf32, #tpu.memory_space<vmem>>, vector<16x128xf32>
    tpu.vector_store %arg11[%c0_8, %c384], %27 {strides = array<i32>} : memref<16x512xf32, #tpu.memory_space<vmem>>, vector<16x128xf32>,
    %c0_9 = arith.constant 0 : index
    %c128 = arith.constant 128 : index
    %30 = vector.load %arg11[%c0_9, %c128] : memref<16x512xf32, #tpu.memory_space<vmem>>, vector<16x256xf32>
    tpu.vector_store %arg11[%c0_9, %c128], %1 {strides = array<i32>} : memref<16x512xf32, #tpu.memory_space<vmem>>, vector<16x256xf32>,
    %c0_10 = arith.constant 0 : index
    %c111 = arith.constant 111 : index
    %31 = vector.load %arg11[%c0_10, %c111] : memref<16x512xf32, #tpu.memory_space<vmem>>, vector<16x256xf32>
    %32 = vector.broadcast %22 : vector<1x256xf32> to vector<16x256xf32>
    %33 = arith.mulf %31, %32 : vector<16x256xf32>
    %34 = arith.truncf %33 : vector<16x256xf32> to vector<16x256xbf16>
    %c0_11 = arith.constant 0 : index
    %c0_12 = arith.constant 0 : index
    %35 = vector.load %arg12[%c0_11, %c0_12] : memref<144x256xbf16, #tpu.memory_space<vmem>>, vector<16x256xbf16>
    tpu.vector_store %arg12[%c0_11, %c0_12], %34 {strides = array<i32>} : memref<144x256xbf16, #tpu.memory_space<vmem>>, vector<16x256xbf16>,
    %c0_13 = arith.constant 0 : index
    %c112 = arith.constant 112 : index
    %36 = vector.load %arg11[%c0_13, %c112] : memref<16x512xf32, #tpu.memory_space<vmem>>, vector<16x256xf32>
    %37 = arith.truncf %36 : vector<16x256xf32> to vector<16x256xbf16>
    %c16 = arith.constant 16 : index
    %c0_14 = arith.constant 0 : index
    %38 = vector.load %arg12[%c16, %c0_14] : memref<144x256xbf16, #tpu.memory_space<vmem>>, vector<16x256xbf16>
    tpu.vector_store %arg12[%c16, %c0_14], %37 {strides = array<i32>} : memref<144x256xbf16, #tpu.memory_space<vmem>>, vector<16x256xbf16>,
    %c0_15 = arith.constant 0 : index
    %c113 = arith.constant 113 : index
    %39 = vector.load %arg11[%c0_15, %c113] : memref<16x512xf32, #tpu.memory_space<vmem>>, vector<16x256xf32>
    %40 = vector.broadcast %26 : vector<1x256xf32> to vector<16x256xf32>
    %41 = arith.mulf %39, %40 : vector<16x256xf32>
    %42 = arith.truncf %41 : vector<16x256xf32> to vector<16x256xbf16>
    %c32 = arith.constant 32 : index
    %c0_16 = arith.constant 0 : index
    %43 = vector.load %arg12[%c32, %c0_16] : memref<144x256xbf16, #tpu.memory_space<vmem>>, vector<16x256xbf16>
    tpu.vector_store %arg12[%c32, %c0_16], %42 {strides = array<i32>} : memref<144x256xbf16, #tpu.memory_space<vmem>>, vector<16x256xbf16>,
    %c0_17 = arith.constant 0 : index
    %c127 = arith.constant 127 : index
    %44 = vector.load %arg11[%c0_17, %c127] : memref<16x512xf32, #tpu.memory_space<vmem>>, vector<16x256xf32>
    %45 = vector.broadcast %22 : vector<1x256xf32> to vector<16x256xf32>
    %46 = arith.mulf %44, %45 : vector<16x256xf32>
    %47 = arith.truncf %46 : vector<16x256xf32> to vector<16x256xbf16>
    %c48 = arith.constant 48 : index
    %c0_18 = arith.constant 0 : index
    %48 = vector.load %arg12[%c48, %c0_18] : memref<144x256xbf16, #tpu.memory_space<vmem>>, vector<16x256xbf16>
    tpu.vector_store %arg12[%c48, %c0_18], %47 {strides = array<i32>} : memref<144x256xbf16, #tpu.memory_space<vmem>>, vector<16x256xbf16>,
    %c0_19 = arith.constant 0 : index
    %c128_20 = arith.constant 128 : index
    %49 = vector.load %arg11[%c0_19, %c128_20] : memref<16x512xf32, #tpu.memory_space<vmem>>, vector<16x256xf32>
    %50 = arith.truncf %49 : vector<16x256xf32> to vector<16x256xbf16>
    %c64 = arith.constant 64 : index
    %c0_21 = arith.constant 0 : index
    %51 = vector.load %arg12[%c64, %c0_21] : memref<144x256xbf16, #tpu.memory_space<vmem>>, vector<16x256xbf16>
    tpu.vector_store %arg12[%c64, %c0_21], %50 {strides = array<i32>} : memref<144x256xbf16, #tpu.memory_space<vmem>>, vector<16x256xbf16>,
    %c0_22 = arith.constant 0 : index
    %c129 = arith.constant 129 : index
    %52 = vector.load %arg11[%c0_22, %c129] : memref<16x512xf32, #tpu.memory_space<vmem>>, vector<16x256xf32>
    %53 = vector.broadcast %26 : vector<1x256xf32> to vector<16x256xf32>
    %54 = arith.mulf %52, %53 : vector<16x256xf32>
    %55 = arith.truncf %54 : vector<16x256xf32> to vector<16x256xbf16>
    %c80 = arith.constant 80 : index
    %c0_23 = arith.constant 0 : index
    %56 = vector.load %arg12[%c80, %c0_23] : memref<144x256xbf16, #tpu.memory_space<vmem>>, vector<16x256xbf16>
    tpu.vector_store %arg12[%c80, %c0_23], %55 {strides = array<i32>} : memref<144x256xbf16, #tpu.memory_space<vmem>>, vector<16x256xbf16>,
    %c0_24 = arith.constant 0 : index
    %c143 = arith.constant 143 : index
    %57 = vector.load %arg11[%c0_24, %c143] : memref<16x512xf32, #tpu.memory_space<vmem>>, vector<16x256xf32>
    %58 = vector.broadcast %22 : vector<1x256xf32> to vector<16x256xf32>
    %59 = arith.mulf %57, %58 : vector<16x256xf32>
    %60 = arith.truncf %59 : vector<16x256xf32> to vector<16x256xbf16>
    %c96 = arith.constant 96 : index
    %c0_25 = arith.constant 0 : index
    %61 = vector.load %arg12[%c96, %c0_25] : memref<144x256xbf16, #tpu.memory_space<vmem>>, vector<16x256xbf16>
    tpu.vector_store %arg12[%c96, %c0_25], %60 {strides = array<i32>} : memref<144x256xbf16, #tpu.memory_space<vmem>>, vector<16x256xbf16>,
    %c0_26 = arith.constant 0 : index
    %c144 = arith.constant 144 : index
    %62 = vector.load %arg11[%c0_26, %c144] : memref<16x512xf32, #tpu.memory_space<vmem>>, vector<16x256xf32>
    %63 = arith.truncf %62 : vector<16x256xf32> to vector<16x256xbf16>
    %c112_27 = arith.constant 112 : index
    %c0_28 = arith.constant 0 : index
    %64 = vector.load %arg12[%c112_27, %c0_28] : memref<144x256xbf16, #tpu.memory_space<vmem>>, vector<16x256xbf16>
    tpu.vector_store %arg12[%c112_27, %c0_28], %63 {strides = array<i32>} : memref<144x256xbf16, #tpu.memory_space<vmem>>, vector<16x256xbf16>,
    %c0_29 = arith.constant 0 : index
    %c145 = arith.constant 145 : index
    %65 = vector.load %arg11[%c0_29, %c145] : memref<16x512xf32, #tpu.memory_space<vmem>>, vector<16x256xf32>
    %66 = vector.broadcast %26 : vector<1x256xf32> to vector<16x256xf32>
    %67 = arith.mulf %65, %66 : vector<16x256xf32>
    %68 = arith.truncf %67 : vector<16x256xf32> to vector<16x256xbf16>
    %c128_30 = arith.constant 128 : index
    %c0_31 = arith.constant 0 : index
    %69 = vector.load %arg12[%c128_30, %c0_31] : memref<144x256xbf16, #tpu.memory_space<vmem>>, vector<16x256xbf16>
    tpu.vector_store %arg12[%c128_30, %c0_31], %68 {strides = array<i32>} : memref<144x256xbf16, #tpu.memory_space<vmem>>, vector<16x256xbf16>,
    %c0_32 = arith.constant 0 : index
    %c0_33 = arith.constant 0 : index
    %70 = vector.load %arg2[%c0_32, %c0_33] : memref<16x144xbf16, #tpu.memory_space<vmem>>, vector<16x144xbf16>
    %c0_34 = arith.constant 0 : index
    %c0_35 = arith.constant 0 : index
    %71 = vector.load %arg12[%c0_34, %c0_35] : memref<144x256xbf16, #tpu.memory_space<vmem>>, vector<144x256xbf16>
    %cst_36 = arith.constant dense<0.000000e+00> : vector<16x256xf32>
    %72 = tpu.matmul %70, %71, %cst_36 {dimension_numbers = #tpu.dot_dimension_numbers<[1], [0], [0], [1], [0, 0, 1, 1], [], []>} : vector<16x144xbf16>, vector<144x256xbf16>, vector<16x256xf32> -> vector<16x256xf32>
    %c0_37 = arith.constant 0 : index
    %c0_38 = arith.constant 0 : index
    %73 = vector.load %arg3[%c0_37, %c0_38] : memref<16x1xf32, #tpu.memory_space<vmem>>, vector<16x1xf32>
    %74 = vector.broadcast %73 : vector<16x1xf32> to vector<16x256xf32>
    %75 = arith.addf %72, %74 : vector<16x256xf32>
    %cst_39 = arith.constant 0.000000e+00 : f32
    %76 = vector.broadcast %cst_39 : f32 to vector<16x256xf32>
    %77 = arith.maximumf %75, %76 : vector<16x256xf32>
    %c0_40 = arith.constant 0 : index
    %c128_41 = arith.constant 128 : index
    %78 = vector.load %arg11[%c0_40, %c128_41] : memref<16x512xf32, #tpu.memory_space<vmem>>, vector<16x256xf32>
    tpu.vector_store %arg11[%c0_40, %c128_41], %77 {strides = array<i32>} : memref<16x512xf32, #tpu.memory_space<vmem>>, vector<16x256xf32>,
    %c0_42 = arith.constant 0 : index
    %c111_43 = arith.constant 111 : index
    %79 = vector.load %arg11[%c0_42, %c111_43] : memref<16x512xf32, #tpu.memory_space<vmem>>, vector<16x256xf32>
    %80 = vector.broadcast %22 : vector<1x256xf32> to vector<16x256xf32>
    %81 = arith.mulf %79, %80 : vector<16x256xf32>
    %82 = arith.truncf %81 : vector<16x256xf32> to vector<16x256xbf16>
    %c0_44 = arith.constant 0 : index
    %c0_45 = arith.constant 0 : index
    %83 = vector.load %arg12[%c0_44, %c0_45] : memref<144x256xbf16, #tpu.memory_space<vmem>>, vector<16x256xbf16>
    tpu.vector_store %arg12[%c0_44, %c0_45], %82 {strides = array<i32>} : memref<144x256xbf16, #tpu.memory_space<vmem>>, vector<16x256xbf16>,
    %c0_46 = arith.constant 0 : index
    %c112_47 = arith.constant 112 : index
    %84 = vector.load %arg11[%c0_46, %c112_47] : memref<16x512xf32, #tpu.memory_space<vmem>>, vector<16x256xf32>
    %85 = arith.truncf %84 : vector<16x256xf32> to vector<16x256xbf16>
    %c16_48 = arith.constant 16 : index
    %c0_49 = arith.constant 0 : index
    %86 = vector.load %arg12[%c16_48, %c0_49] : memref<144x256xbf16, #tpu.memory_space<vmem>>, vector<16x256xbf16>
    tpu.vector_store %arg12[%c16_48, %c0_49], %85 {strides = array<i32>} : memref<144x256xbf16, #tpu.memory_space<vmem>>, vector<16x256xbf16>,
    %c0_50 = arith.constant 0 : index
    %c113_51 = arith.constant 113 : index
    %87 = vector.load %arg11[%c0_50, %c113_51] : memref<16x512xf32, #tpu.memory_space<vmem>>, vector<16x256xf32>
    %88 = vector.broadcast %26 : vector<1x256xf32> to vector<16x256xf32>
    %89 = arith.mulf %87, %88 : vector<16x256xf32>
    %90 = arith.truncf %89 : vector<16x256xf32> to vector<16x256xbf16>
    %c32_52 = arith.constant 32 : index
    %c0_53 = arith.constant 0 : index
    %91 = vector.load %arg12[%c32_52, %c0_53] : memref<144x256xbf16, #tpu.memory_space<vmem>>, vector<16x256xbf16>
    tpu.vector_store %arg12[%c32_52, %c0_53], %90 {strides = array<i32>} : memref<144x256xbf16, #tpu.memory_space<vmem>>, vector<16x256xbf16>,
    %c0_54 = arith.constant 0 : index
    %c127_55 = arith.constant 127 : index
    %92 = vector.load %arg11[%c0_54, %c127_55] : memref<16x512xf32, #tpu.memory_space<vmem>>, vector<16x256xf32>
    %93 = vector.broadcast %22 : vector<1x256xf32> to vector<16x256xf32>
    %94 = arith.mulf %92, %93 : vector<16x256xf32>
    %95 = arith.truncf %94 : vector<16x256xf32> to vector<16x256xbf16>
    %c48_56 = arith.constant 48 : index
    %c0_57 = arith.constant 0 : index
    %96 = vector.load %arg12[%c48_56, %c0_57] : memref<144x256xbf16, #tpu.memory_space<vmem>>, vector<16x256xbf16>
    tpu.vector_store %arg12[%c48_56, %c0_57], %95 {strides = array<i32>} : memref<144x256xbf16, #tpu.memory_space<vmem>>, vector<16x256xbf16>,
    %c0_58 = arith.constant 0 : index
    %c128_59 = arith.constant 128 : index
    %97 = vector.load %arg11[%c0_58, %c128_59] : memref<16x512xf32, #tpu.memory_space<vmem>>, vector<16x256xf32>
    %98 = arith.truncf %97 : vector<16x256xf32> to vector<16x256xbf16>
    %c64_60 = arith.constant 64 : index
    %c0_61 = arith.constant 0 : index
    %99 = vector.load %arg12[%c64_60, %c0_61] : memref<144x256xbf16, #tpu.memory_space<vmem>>, vector<16x256xbf16>
    tpu.vector_store %arg12[%c64_60, %c0_61], %98 {strides = array<i32>} : memref<144x256xbf16, #tpu.memory_space<vmem>>, vector<16x256xbf16>,
    %c0_62 = arith.constant 0 : index
    %c129_63 = arith.constant 129 : index
    %100 = vector.load %arg11[%c0_62, %c129_63] : memref<16x512xf32, #tpu.memory_space<vmem>>, vector<16x256xf32>
    %101 = vector.broadcast %26 : vector<1x256xf32> to vector<16x256xf32>
    %102 = arith.mulf %100, %101 : vector<16x256xf32>
    %103 = arith.truncf %102 : vector<16x256xf32> to vector<16x256xbf16>
    %c80_64 = arith.constant 80 : index
    %c0_65 = arith.constant 0 : index
    %104 = vector.load %arg12[%c80_64, %c0_65] : memref<144x256xbf16, #tpu.memory_space<vmem>>, vector<16x256xbf16>
    tpu.vector_store %arg12[%c80_64, %c0_65], %103 {strides = array<i32>} : memref<144x256xbf16, #tpu.memory_space<vmem>>, vector<16x256xbf16>,
    %c0_66 = arith.constant 0 : index
    %c143_67 = arith.constant 143 : index
    %105 = vector.load %arg11[%c0_66, %c143_67] : memref<16x512xf32, #tpu.memory_space<vmem>>, vector<16x256xf32>
    %106 = vector.broadcast %22 : vector<1x256xf32> to vector<16x256xf32>
    %107 = arith.mulf %105, %106 : vector<16x256xf32>
    %108 = arith.truncf %107 : vector<16x256xf32> to vector<16x256xbf16>
    %c96_68 = arith.constant 96 : index
    %c0_69 = arith.constant 0 : index
    %109 = vector.load %arg12[%c96_68, %c0_69] : memref<144x256xbf16, #tpu.memory_space<vmem>>, vector<16x256xbf16>
    tpu.vector_store %arg12[%c96_68, %c0_69], %108 {strides = array<i32>} : memref<144x256xbf16, #tpu.memory_space<vmem>>, vector<16x256xbf16>,
    %c0_70 = arith.constant 0 : index
    %c144_71 = arith.constant 144 : index
    %110 = vector.load %arg11[%c0_70, %c144_71] : memref<16x512xf32, #tpu.memory_space<vmem>>, vector<16x256xf32>
    %111 = arith.truncf %110 : vector<16x256xf32> to vector<16x256xbf16>
    %c112_72 = arith.constant 112 : index
    %c0_73 = arith.constant 0 : index
    %112 = vector.load %arg12[%c112_72, %c0_73] : memref<144x256xbf16, #tpu.memory_space<vmem>>, vector<16x256xbf16>
    tpu.vector_store %arg12[%c112_72, %c0_73], %111 {strides = array<i32>} : memref<144x256xbf16, #tpu.memory_space<vmem>>, vector<16x256xbf16>,
    %c0_74 = arith.constant 0 : index
    %c145_75 = arith.constant 145 : index
    %113 = vector.load %arg11[%c0_74, %c145_75] : memref<16x512xf32, #tpu.memory_space<vmem>>, vector<16x256xf32>
    %114 = vector.broadcast %26 : vector<1x256xf32> to vector<16x256xf32>
    %115 = arith.mulf %113, %114 : vector<16x256xf32>
    %116 = arith.truncf %115 : vector<16x256xf32> to vector<16x256xbf16>
    %c128_76 = arith.constant 128 : index
    %c0_77 = arith.constant 0 : index
    %117 = vector.load %arg12[%c128_76, %c0_77] : memref<144x256xbf16, #tpu.memory_space<vmem>>, vector<16x256xbf16>
    tpu.vector_store %arg12[%c128_76, %c0_77], %116 {strides = array<i32>} : memref<144x256xbf16, #tpu.memory_space<vmem>>, vector<16x256xbf16>,
    %c0_78 = arith.constant 0 : index
    %c0_79 = arith.constant 0 : index
    %118 = vector.load %arg4[%c0_78, %c0_79] : memref<16x144xbf16, #tpu.memory_space<vmem>>, vector<16x144xbf16>
    %c0_80 = arith.constant 0 : index
    %c0_81 = arith.constant 0 : index
    %119 = vector.load %arg12[%c0_80, %c0_81] : memref<144x256xbf16, #tpu.memory_space<vmem>>, vector<144x256xbf16>
    %cst_82 = arith.constant dense<0.000000e+00> : vector<16x256xf32>
    %120 = tpu.matmul %118, %119, %cst_82 {dimension_numbers = #tpu.dot_dimension_numbers<[1], [0], [0], [1], [0, 0, 1, 1], [], []>} : vector<16x144xbf16>, vector<144x256xbf16>, vector<16x256xf32> -> vector<16x256xf32>
    %c0_83 = arith.constant 0 : index
    %c0_84 = arith.constant 0 : index
    %121 = vector.load %arg5[%c0_83, %c0_84] : memref<16x1xf32, #tpu.memory_space<vmem>>, vector<16x1xf32>
    %122 = vector.broadcast %121 : vector<16x1xf32> to vector<16x256xf32>
    %123 = arith.addf %120, %122 : vector<16x256xf32>
    %cst_85 = arith.constant dense<0.000000e+00> : vector<16xf32>
    %124 = vector.multi_reduction <add>, %123, %cst_85 [1] : vector<16x256xf32> to vector<16xf32>
    %125 = vector.shape_cast %124 : vector<16xf32> to vector<16x1xf32>
    %cst_86 = arith.constant 2.560000e+02 : f32
    %126 = vector.broadcast %cst_86 : f32 to vector<16x1xf32>
    %127 = arith.divf %125, %126 : vector<16x1xf32>
    %c0_87 = arith.constant 0 : index
    %c0_88 = arith.constant 0 : index
    %128 = vector.load %arg6[%c0_87, %c0_88] : memref<4x16xf32, #tpu.memory_space<vmem>>, vector<4x16xf32>
    %cst_89 = arith.constant dense<0.000000e+00> : vector<4x256xf32>
    %129 = tpu.matmul %128, %123, %cst_89 {dimension_numbers = #tpu.dot_dimension_numbers<[1], [0], [0], [1], [0, 0, 1, 1], [], []>} : vector<4x16xf32>, vector<16x256xf32>, vector<4x256xf32> -> vector<4x256xf32>
    %cst_90 = arith.constant dense<0.000000e+00> : vector<4xf32>
    %130 = vector.multi_reduction <add>, %129, %cst_90 [1] : vector<4x256xf32> to vector<4xf32>
    %131 = vector.shape_cast %130 : vector<4xf32> to vector<4x1xf32>
    %cst_91 = arith.constant 2.560000e+02 : f32
    %132 = vector.broadcast %cst_91 : f32 to vector<4x1xf32>
    %133 = arith.divf %131, %132 : vector<4x1xf32>
    %c0_92 = arith.constant 0 : index
    %c0_93 = arith.constant 0 : index
    %134 = vector.load %arg7[%c0_92, %c0_93] : memref<4x1xf32, #tpu.memory_space<vmem>>, vector<4x1xf32>
    %135 = arith.addf %133, %134 : vector<4x1xf32>
    %cst_94 = arith.constant 0.000000e+00 : f32
    %136 = vector.broadcast %cst_94 : f32 to vector<4x1xf32>
    %137 = arith.maximumf %135, %136 : vector<4x1xf32>
    %c0_95 = arith.constant 0 : index
    %c0_96 = arith.constant 0 : index
    %138 = vector.load %arg8[%c0_95, %c0_96] : memref<16x4xf32, #tpu.memory_space<vmem>>, vector<16x4xf32>
    %c0_97 = arith.constant 0 : index
    %c0_98 = arith.constant 0 : index
    %139 = vector.load %arg9[%c0_97, %c0_98] : memref<16x1xf32, #tpu.memory_space<vmem>>, vector<16x1xf32>
    %140 = vector.extract_strided_slice %138 {offsets = [0, 0], sizes = [16, 1], strides = [1, 1]} : vector<16x4xf32> to vector<16x1xf32>
    %141 = vector.extract_strided_slice %137 {offsets = [0, 0], sizes = [1, 1], strides = [1, 1]} : vector<4x1xf32> to vector<1x1xf32>
    %142 = vector.broadcast %141 : vector<1x1xf32> to vector<16x1xf32>
    %143 = arith.mulf %140, %142 : vector<16x1xf32>
    %144 = arith.addf %139, %143 : vector<16x1xf32>
    %145 = vector.extract_strided_slice %138 {offsets = [0, 1], sizes = [16, 1], strides = [1, 1]} : vector<16x4xf32> to vector<16x1xf32>
    %146 = vector.extract_strided_slice %137 {offsets = [1, 0], sizes = [1, 1], strides = [1, 1]} : vector<4x1xf32> to vector<1x1xf32>
    %147 = vector.broadcast %146 : vector<1x1xf32> to vector<16x1xf32>
    %148 = arith.mulf %145, %147 : vector<16x1xf32>
    %149 = arith.addf %144, %148 : vector<16x1xf32>
    %150 = vector.extract_strided_slice %138 {offsets = [0, 2], sizes = [16, 1], strides = [1, 1]} : vector<16x4xf32> to vector<16x1xf32>
    %151 = vector.extract_strided_slice %137 {offsets = [2, 0], sizes = [1, 1], strides = [1, 1]} : vector<4x1xf32> to vector<1x1xf32>
    %152 = vector.broadcast %151 : vector<1x1xf32> to vector<16x1xf32>
    %153 = arith.mulf %150, %152 : vector<16x1xf32>
    %154 = arith.addf %149, %153 : vector<16x1xf32>
    %155 = vector.extract_strided_slice %138 {offsets = [0, 3], sizes = [16, 1], strides = [1, 1]} : vector<16x4xf32> to vector<16x1xf32>
    %156 = vector.extract_strided_slice %137 {offsets = [3, 0], sizes = [1, 1], strides = [1, 1]} : vector<4x1xf32> to vector<1x1xf32>
    %157 = vector.broadcast %156 : vector<1x1xf32> to vector<16x1xf32>
    %158 = arith.mulf %155, %157 : vector<16x1xf32>
    %159 = arith.addf %154, %158 : vector<16x1xf32>
    %cst_99 = arith.constant 0.000000e+00 : f32
    %160 = vector.broadcast %cst_99 : f32 to vector<16x1xf32>
    %161 = arith.subf %160, %159 : vector<16x1xf32>
    %162 = math.exp %161 : vector<16x1xf32>
    %cst_100 = arith.constant 1.000000e+00 : f32
    %163 = vector.broadcast %cst_100 : f32 to vector<16x1xf32>
    %164 = arith.addf %163, %162 : vector<16x1xf32>
    %165 = tpu.reciprocal %164 {approx = true} : vector<16x1xf32> -> vector<16x1xf32>
    %166 = arith.mulf %165, %127 : vector<16x1xf32>
    %167 = vector.broadcast %166 : vector<16x1xf32> to vector<16x256xf32>
    %168 = arith.addf %1, %167 : vector<16x256xf32>
    %169 = vector.shape_cast %168 : vector<16x256xf32> to vector<1x16x256xf32>
    %c0_101 = arith.constant 0 : index
    %c0_102 = arith.constant 0 : index
    %c0_103 = arith.constant 0 : index
    %170 = vector.load %arg10[%c0_101, %c0_102, %c0_103] : memref<1x16x256xf32, #tpu.memory_space<vmem>>, vector<1x16x256xf32>
    tpu.vector_store %arg10[%c0_101, %c0_102, %c0_103], %169 {strides = array<i32>} : memref<1x16x256xf32, #tpu.memory_space<vmem>>, vector<1x16x256xf32>,
    return
  }
  func.func @transform_0(%arg0: i32) -> (i32, i32, i32) {
    %c0_i32 = arith.constant 0 : i32
    %c0_i32_0 = arith.constant 0 : i32
    %c0_i32_1 = arith.constant 0 : i32
    return %arg0, %c0_i32, %c0_i32_0 : i32, i32, i32
  }
  func.func @transform_1(%arg0: i32) -> (i32, i32) {
    %c0_i32 = arith.constant 0 : i32
    %c0_i32_0 = arith.constant 0 : i32
    %c0_i32_1 = arith.constant 0 : i32
    return %c0_i32, %c0_i32_0 : i32, i32
  }
  func.func @transform_2(%arg0: i32) -> (i32, i32) {
    %c0_i32 = arith.constant 0 : i32
    %c0_i32_0 = arith.constant 0 : i32
    %c0_i32_1 = arith.constant 0 : i32
    return %c0_i32, %c0_i32_0 : i32, i32
  }
  func.func @transform_3(%arg0: i32) -> (i32, i32) {
    %c0_i32 = arith.constant 0 : i32
    %c0_i32_0 = arith.constant 0 : i32
    %c0_i32_1 = arith.constant 0 : i32
    return %c0_i32, %c0_i32_0 : i32, i32
  }
  func.func @transform_4(%arg0: i32) -> (i32, i32) {
    %c0_i32 = arith.constant 0 : i32
    %c0_i32_0 = arith.constant 0 : i32
    %c0_i32_1 = arith.constant 0 : i32
    return %c0_i32, %c0_i32_0 : i32, i32
  }
  func.func @transform_5(%arg0: i32) -> (i32, i32) {
    %c0_i32 = arith.constant 0 : i32
    %c0_i32_0 = arith.constant 0 : i32
    %c0_i32_1 = arith.constant 0 : i32
    return %c0_i32, %c0_i32_0 : i32, i32
  }
  func.func @transform_6(%arg0: i32) -> (i32, i32) {
    %c0_i32 = arith.constant 0 : i32
    %c0_i32_0 = arith.constant 0 : i32
    %c0_i32_1 = arith.constant 0 : i32
    return %c0_i32, %c0_i32_0 : i32, i32
  }
  func.func @transform_7(%arg0: i32) -> (i32, i32) {
    %c0_i32 = arith.constant 0 : i32
    %c0_i32_0 = arith.constant 0 : i32
    %c0_i32_1 = arith.constant 0 : i32
    return %c0_i32, %c0_i32_0 : i32, i32
  }
  func.func @transform_8(%arg0: i32) -> (i32, i32) {
    %c0_i32 = arith.constant 0 : i32
    %c0_i32_0 = arith.constant 0 : i32
    %c0_i32_1 = arith.constant 0 : i32
    return %c0_i32, %c0_i32_0 : i32, i32
  }
  func.func @transform_9(%arg0: i32) -> (i32, i32, i32) {
    %c0_i32 = arith.constant 0 : i32
    %c0_i32_0 = arith.constant 0 : i32
    %c0_i32_1 = arith.constant 0 : i32
    return %arg0, %c0_i32, %c0_i32_0 : i32, i32, i32
  }
}

</mosaic_0001>

<bundles_post_ra>
// kernel: ca_layer_forward.1
= control target key start
LH: loop header
LB: loop body
LE: loop exit
PB: predicated region body
PF: predicated region fallthrough
CT: control target
= control target key end

     0   :  { %s2055_s30 = smov 0   ;;  %s2512_s0 = inlined_call_operand.vmem [shape: f32[2,16,256], index: 0, kind: input, shape index: {}]   ;;  %s2513_s1 = inlined_call_operand.vmem [shape: bf16[16,144], index: 1, kind: input, shape index: {}]   ;;  %s2514_s2 = inlined_call_operand.vmem [shape: f32[16,1], index: 2, kind: input, shape index: {}]   ;;  %s2515_s3 = inlined_call_operand.vmem [shape: bf16[16,144], index: 3, kind: input, shape index: {}]   ;;  %s2516_s4 = inlined_call_operand.vmem [shape: f32[16,1], index: 4, kind: input, shape index: {}]   ;;  %s2517_s5 = inlined_call_operand.vmem [shape: f32[4,16], index: 5, kind: input, shape index: {}]   ;;  %s2518_s6 = inlined_call_operand.vmem [shape: f32[4,1], index: 6, kind: input, shape index: {}]   ;;  %s2519_s7 = inlined_call_operand.vmem [shape: f32[16,4], index: 7, kind: input, shape index: {}]   ;;  %s2520_s8 = inlined_call_operand.vmem [shape: f32[16,1], index: 8, kind: input, shape index: {}]   ;;  %s2521_s9 = inlined_call_operand.vmem [shape: f32[2,16,256], index: 9, kind: output, shape index: {}]  }
   0x1 LB: > { %s1687_s10 = sadd.s32 4294967295, %s1987_s30   ;;  %p1691_p0 = scmp.ge.s32.totalorder %s1987_s30, 1  ;;  %s1987_s30 = sphi %s2055_s30, %s19_s30  }
   0x2   : > { %p287_p1 = scmp.lt.s32.totalorder %s1987_s30, 3 }
   0x4   : > { %p288_p2 = pnand %p1691_p0, %p287_p1 }
   0x5   : > { %p323_p3 = scmp.lt.s32.totalorder (!%p288_p2), %s1687_s10, 1  ;;  %s1990_s15 = smov (!%p288_p2), 15  }
   0x6   : > { %291 = sbr.rel (%p288_p2) target bundleno = 1507 (0x5e3), region = 56  ;;  %s1991_s16 = smov (!%p288_p2), 127  }
   0x7   : > { %s1992_s17 = smov (!%p288_p2), 111   ;;  %s1993_s18 = smov (!%p288_p2), 1  }
   0x8   : > { %s1994_s19 = smov (!%p288_p2), 113   ;;  %s1995_s20 = smov (!%p288_p2), 17  }
   0x9   : > { %s1996_s21 = smov (!%p288_p2), 112   ;;  %s1998_s22 = smov (!%p288_p2), 16  }
   0xa   : > { %s2004_s27 = smov (!%p288_p2), 125  }
   0xb   : > { %v338_v0 = vlaneseq  ;;  %s2523_s10 = smov (!%p323_p3, %s1687_s10), 1  ;;  %v1989_v5 = vmov 0.0   ;;  %v1997_v18 = vmov 0.0|0.0   ;;  %vm567_vm4 = vcmask 7168  }
   0xc   : > { %s1868_s11 = sshll.u32 %s2523_s10, 5  ;;  %v1999_v49 = vmov 0   ;;  %vm517_vm5 = vcmask 121856   ;;  %vm535_vm6 = vcmask 1039360   ;;  %vm397_vm7 = vcmask 908288  }
   0xd   : > { %v339_v1 = vand.u32 127, %v338_v0  ;;  %s2072_s14 = scalar_lea.vmem %s2512_s0, %s1868_s11  ;;  %1964 = vset.pattern.permute.xlu2 %v1999_v49  ;;  %1965 = vset.pattern.permute.xlu0 %v1999_v49  ;;  %vm485_vm8 = vcmask 924672   ;;  %vm430_vm9 = vcmask 138240   ;;  %vm428_vm10 = vcmask 1043456   ;;  %s332_s24 = scalar_lea.vmem %s2521_s9, %s1868_s11 }
   0xe   : > { %v2076_v8 = vld [vmem:[%s2072_s14] sm:$0xff]  ;;  %v2079_v9 = vld [vmem:[%s2072_s14 + $0x8] sm:$0xff]  ;;  %v2082_v10 = vld [vmem:[%s2072_s14 + $0x10] sm:$0xff]  ;;  %1966 = vset.pattern.permute.xlu1 %v1999_v49  ;;  %vm710_vm11 = vcmask 916480   ;;  %vm465_vm12 = vcmask 130048  }
   0xf   : > { %v340_v2 = vadd.s32 128, %v339_v1  ;;  %v345_v3 = vand.u32 15, %v339_v1  ;;  %v2085_v12 = vld [vmem:[%s2072_s14 + $0x18] sm:$0xff]  ;;  %v579_v13 = vpack.c.bf16 %v2079_v9, %v2076_v8  ;;  %v446_v19 = vpack.c.bf16 %v2082_v10, %v1989_v5 }
  0x10   : > { %v580_v14 = vpack.c.bf16 %v2085_v12, %v2082_v10  ;;  %v444_v20 = vpack.c.bf16 %v2076_v8, %v1989_v5  ;;  %v445_v21 = vpack.c.bf16 %v2079_v9, %v2079_v9  ;;  %v447_v22 = vpack.c.bf16 %v2085_v12, %v2085_v12 }
  0x11   : > { %v352_v4 = vand.u32 15, %v340_v2  ;;  %vm365_vm0 = vcmp.ne.s32.totalorder %v345_v3, 0  ;;  %vm371_vm2 = vcmp.ne.s32.totalorder %v345_v3, 15  ;;  %581 = vst [vmem:[#allocation3 + $0x40] sm:$0xff] %v579_v13 }
  0x12   : > { %v1696_v6 = vsel %vm365_vm0, 1.0, %v1989_v5  ;;  %v1698_v15 = vsel %vm371_vm2, 1.0, %v1989_v5  ;;  %582 = vst [vmem:[#allocation3 + $0x48] sm:$0xff] %v580_v14 }
  0x13   : > { %vm366_vm1 = vcmp.ne.s32.totalorder %v352_v4, 0  ;;  %vm372_vm3 = vcmp.ne.s32.totalorder %v352_v4, 15 }
  0x14   : > { %v1697_v7 = vsel %vm366_vm1, 1.0, %v1989_v5  ;;  %v1699_v16 = vsel %vm372_vm3, 1.0, %v1989_v5 }
  0x15   : > { %v1934_v11 = vpack.i.bf16 %v1697_v7, %v1696_v6  ;;  %v1939_v17 = vpack.i.bf16 %v1699_v16, %v1698_v15 }
  0x17   : > { %1935 = vrot.lane.b32.xlu0 %v1934_v11, %s1990_s15  ;;  %1945 = vrot.lane.b32.xlu1 %v1934_v11, %s1991_s16 }
  0x18   : > { %1955 = vrot.lane.b32.xlu2 %v1934_v11, %s1992_s17 }
  0x1f   : > { %1940 = vrot.lane.b32.xlu0 %v1939_v17, %s1993_s18  ;;  %1950 = vrot.lane.b32.xlu1 %v1939_v17, %s1994_s19 }
  0x20   : > { %1960 = vrot.lane.b32.xlu2 %v1939_v17, %s1995_s20 }
  0x27   : > { %697 = vrot.lane.b32.xlu0 %v579_v13, %s1996_s21  ;;  %699 = vrot.lane.b32.xlu1 %v1997_v18, %s1996_s21 }
  0x28   : > { %701 = vrot.lane.b32.xlu2 %v580_v14, %s1996_s21 }
  0x2f   : > { %703 = vrot.lane.b32.xlu0 %v1997_v18, %s1996_s21  ;;  %456 = vrot.lane.b32.xlu1 %v446_v19, %s1998_s22 }
  0x30   : > { %452 = vrot.lane.b32.xlu2 %v444_v20, %s1998_s22 }
  0x37   : > { %454 = vrot.lane.b32.xlu0 %v445_v21, %s1998_s22 }
  0x38   : > { %458 = vrot.lane.b32.xlu2 %v447_v22, %s1998_s22 }
  0x72   : > { %v1956_v38 = vpop.permute.xlu2 %1955 }
  0x73   : > { %v2147_v42 = vunpack.i.h.bf16 %v1956_v38  ;;  %v1957_v1 = vunpack.i.l.bf16 %v1956_v38 }
  0x75   : > { %v404_v47 = vmul.f32 %v2147_v42, %v2079_v9  ;;  %v407_v48 = vmul.f32 %v2147_v42, %v2085_v12  ;;  %v2192_v6 = vsel %vm397_vm7, %v1957_v1, %v2147_v42  ;;  %v2204_v16 = vmul.f32 0.0, %v1957_v1 }
  0x76   : > { %v406_v17 = vmul.f32 %v2192_v6, %v2082_v10 }
  0x77   : > { %v409_v54 = vpack.c.bf16 %v404_v47, %v404_v47  ;;  %v411_v55 = vpack.c.bf16 %v407_v48, %v407_v48 }
  0x7a   : > { %v1961_v14 = vpop.permute.xlu2 %1960 }
  0x7b   : > { %v1963_v19 = vunpack.i.h.bf16 %v1961_v14 }
  0x89   : > { %v1936_v23 = vpop.permute.xlu0 %1935  ;;  %v1946_v24 = vpop.permute.xlu1 %1945 }
  0x8a   : > { %v1938_v25 = vunpack.i.h.bf16 %v1936_v23  ;;  %v2117_v27 = vunpack.i.h.bf16 %v1946_v24  ;;  %v2160_v50 = vunpack.i.l.bf16 %v1936_v23  ;;  %v1947_v53 = vunpack.i.l.bf16 %v1946_v24 }
  0x8b   : > { %v410_v23 = vpack.c.bf16 %v406_v17, %v2204_v16  ;;  %v735_v24 = vmul.f32 0.0, %v1963_v19 }
  0x8c   : > { %v650_v26 = vmul.f32 0.0, %v1938_v25  ;;  %v542_v29 = vmul.f32 %v2117_v27, %v2079_v9  ;;  %v545_v40 = vmul.f32 %v2117_v27, %v2085_v12  ;;  %v2168_v56 = vsel %vm517_vm5, %v2160_v50, %v1938_v25 }
  0x8d   : > { %v2172_v58 = vsel %vm535_vm6, %v1947_v53, %v2117_v27  ;;  %v648_v59 = vmul.f32 %v2160_v50, %v2076_v8  ;;  %v649_v60 = vmul.f32 %v2168_v56, %v2079_v9  ;;  %v651_v61 = vmul.f32 %v2160_v50, %v2082_v10 }
  0x8e   : > { %v2119_v28 = vpack.c.bf16 %v650_v26, %v650_v26  ;;  %v547_v35 = vpack.c.bf16 %v542_v29, %v542_v29  ;;  %v549_v45 = vpack.c.bf16 %v545_v40, %v545_v40  ;;  %v652_v62 = vmul.f32 %v2168_v56, %v2085_v12 }
  0x8f   : > { %v2185_v63 = vmul.f32 0.0, %v1947_v53  ;;  %v544_v0 = vmul.f32 %v2172_v58, %v2082_v10  ;;  %v654_v2 = vpack.c.bf16 %v649_v60, %v648_v59  ;;  %v541_v13 = vmul.f32 %v2172_v58, %v2076_v8 }
  0x90   : > { %668 = vrot.lane.b32.xlu1 %v2119_v28, %s1994_s19  ;;  %664 = vrot.lane.b32.xlu2 %v2119_v28, %s1994_s19  ;;  %v656_v3 = vpack.c.bf16 %v652_v62, %v651_v61  ;;  %v2217_v25 = vunpack.i.l.bf16 %v1961_v14 }
  0x91   : > { %v1941_v30 = vpop.permute.xlu0 %1940  ;;  %v2127_v31 = vpop.permute.xlu1 %1950  ;;  %v548_v4 = vpack.c.bf16 %v544_v0, %v2185_v63  ;;  %v546_v21 = vpack.c.bf16 %v541_v13, %v2185_v63 }
  0x92   : > { %v1943_v32 = vunpack.i.h.bf16 %v1941_v30  ;;  %v2130_v34 = vunpack.i.h.bf16 %v2127_v31  ;;  %v2145_v41 = vunpack.i.l.bf16 %v1941_v30  ;;  %v1952_v15 = vunpack.i.l.bf16 %v2127_v31 }
  0x93   : > { %v2225_v31 = vpack.c.bf16 %v735_v24, %v735_v24  ;;  %v733_v38 = vmul.f32 %v2217_v25, %v2076_v8 }
  0x94   : > { %v600_v33 = vmul.f32 0.0, %v1943_v32  ;;  %v495_v37 = vmul.f32 %v2130_v34, %v2085_v12  ;;  %v492_v39 = vmul.f32 %v2130_v34, %v2079_v9  ;;  %v2151_v46 = vsel %vm567_vm4, %v2145_v41, %v1943_v32 }
  0x95   : > { %v598_v51 = vmul.f32 %v2145_v41, %v2076_v8  ;;  %v599_v52 = vmul.f32 %v2151_v46, %v2079_v9  ;;  %v601_v7 = vmul.f32 %v2145_v41, %v2082_v10  ;;  %v602_v11 = vmul.f32 %v2151_v46, %v2085_v12 }
  0x96   : > { %v2132_v36 = vpack.c.bf16 %v600_v33, %v600_v33  ;;  %v499_v43 = vpack.c.bf16 %v495_v37, %v495_v37  ;;  %v497_v44 = vpack.c.bf16 %v492_v39, %v492_v39  ;;  %v2211_v22 = vsel %vm485_vm8, %v1952_v15, %v2130_v34  ;;  %v702_v37 = vpop.permute.xlu2 %701 }
  0x97   : > { %v604_v57 = vpack.c.bf16 %v599_v52, %v598_v51  ;;  %v606_v20 = vpack.c.bf16 %v602_v11, %v601_v7  ;;  %v2219_v26 = vmul.f32 0.0, %v1952_v15  ;;  %v494_v29 = vmul.f32 %v2211_v22, %v2082_v10 }
  0x98   : > { %556 = vrot.lane.b32.xlu1 %v547_v35, %s1993_s18  ;;  %614 = vrot.lane.b32.xlu0 %v2132_v36, %s1991_s16  ;;  %v491_v30 = vmul.f32 %v2211_v22, %v2076_v8  ;;  %v2229_v32 = vsel %vm430_vm9, %v2217_v25, %v1963_v19 }
  0x99   : > { %618 = vrot.lane.b32.xlu2 %v2132_v36, %s1991_s16  ;;  %v498_v33 = vpack.c.bf16 %v494_v29, %v2219_v26  ;;  %v734_v39 = vmul.f32 %v2229_v32, %v2079_v9  ;;  %v698_v40 = vpop.permute.xlu0 %697  ;;  %v736_v9 = vmul.f32 %v2217_v25, %v2082_v10  ;;  %v737_v49 = vmul.f32 %v2229_v32, %v2085_v12  ;;  %v700_v52 = vpop.permute.xlu1 %699 }
  0x9a   : > { %v496_v35 = vpack.c.bf16 %v491_v30, %v2219_v26  ;;  %v705_v51 = vrot.slane %v698_v40, 4 }
  0x9e   : > { %v453_v48 = vpop.permute.xlu2 %452 }
  0x9f   : > { %v460_v62 = vrot.slane %v453_v48, 4 }
  0xa0   : > { %510 = vrot.lane.b32.xlu1 %v499_v43, %s1990_s15  ;;  %560 = vrot.lane.b32.xlu0 %v549_v45, %s1993_s18  ;;  %v403_v43 = vmul.f32 %v2192_v6, %v2076_v8  ;;  %v788_v45 = vld [vmem:[%s2514_s2] sm:$0xff]  ;;  %v707_v8 = vrot.slane %v702_v37, 4 }
  0xa1   : > { %506 = vrot.lane.b32.xlu2 %v497_v44, %s1990_s15  ;;  %v739_v44 = vpack.c.bf16 %v734_v39, %v733_v38  ;;  %v704_v53 = vpop.permute.xlu0 %703  ;;  %v457_v1 = vpop.permute.xlu1 %456 }
  0xa2   : > { %v408_v47 = vpack.c.bf16 %v403_v43, %v2204_v16 }
  0xa6   : > { %v459_v12 = vpop.permute.xlu2 %458 }
  0xa7   : > { %v463_v0 = vrot.slane %v459_v12, 4 }
  0xa8   : > { %418 = vrot.lane.b32.xlu1 %v409_v54, %s1995_s20  ;;  %422 = vrot.lane.b32.xlu0 %v411_v55, %s1995_s20  ;;  %v706_v54 = vrot.slane %v700_v52, 4  ;;  %v708_v55 = vrot.slane %v704_v53, 4 }
  0xa9   : > { %612 = vrot.lane.b32.xlu2 %v604_v57, %s1991_s16  ;;  %v741_v57 = vpack.c.bf16 %v737_v49, %v736_v9 }
  0xaa   : > { %v709_v59 = vsel %vm428_vm10, %v705_v51, %v706_v54  ;;  %v712_v60 = vsel %vm428_vm10, %v707_v8, %v708_v55 }
  0xab   : > { %v711_v61 = vsel %vm710_vm11, %v698_v40, %v709_v59  ;;  %v713_v10 = vsel %vm710_vm11, %v702_v37, %v712_v60 }
  0xac   : > { %716 = vst [vmem:[#allocation3 + $0x70] sm:$0xff] %v711_v61 }
  0xad   : > { %717 = vst [vmem:[#allocation3 + $0x78] sm:$0xff] %v713_v10 }
  0xb0   : > { %662 = vrot.lane.b32.xlu1 %v654_v2, %s1994_s19  ;;  %666 = vrot.lane.b32.xlu0 %v656_v3, %s1994_s19  ;;  %v455_v2 = vpop.permute.xlu0 %454  ;;  %v789_v3 = vld [vmem:[%s2514_s2 + $0x8] sm:$0xff] }
  0xb1   : > { %558 = vrot.lane.b32.xlu2 %v548_v4, %s1993_s18  ;;  %v462_v4 = vrot.slane %v457_v1, 4  ;;  %v461_v7 = vrot.slane %v455_v2, 4 }
  0xb3   : > { %v467_v11 = vsel %vm428_vm10, %v462_v4, %v463_v0  ;;  %v464_v13 = vsel %vm428_vm10, %v460_v62, %v461_v7  ;;  %v1766_v17 = vld [vmem:[#allocation3 + $0x70] sm:$0xf] }
  0xb4   : > { %v468_v14 = vsel %vm465_vm12, %v457_v1, %v467_v11  ;;  %v466_v15 = vsel %vm465_vm12, %v453_v48, %v464_v13  ;;  %v1887_v19 = vld [vmem:[#allocation3 + $0x74] sm:$0xf0] }
  0xb5   : > { %472 = vst [vmem:[#allocation3 + $0x18] sm:$0xff] %v468_v14 }
  0xb6   : > { %471 = vst [vmem:[#allocation3 + $0x10] sm:$0xff] %v466_v15 }
  0xb8   : > { %616 = vrot.lane.b32.xlu1 %v606_v20, %s1991_s16  ;;  %554 = vrot.lane.b32.xlu0 %v546_v21, %s1993_s18  ;;  %v1886_v20 = vld [vmem:[#allocation3 + $0x74] sm:$0xf]  ;;  %v1767_v21 = vor.u32 %v1887_v19, %v1766_v17 }
  0xb9   : > { %420 = vrot.lane.b32.xlu2 %v410_v23, %s1995_s20  ;;  %v1768_v23 = vld [vmem:[#allocation3 + $0x78] sm:$0xf0] }
  0xba   : > { %v1771_v24 = vor.u32 %v1886_v20, %v1768_v23  ;;  %903 = vmatpush.bf16.msra.mxu0 %v1767_v21 }
  0xbc   : > { %931 = vmatpush.bf16.msra.mxu2 %v1771_v24 }
  0xc0   : > { %508 = vrot.lane.b32.xlu0 %v498_v33, %s1990_s15  ;;  %504 = vrot.lane.b32.xlu1 %v496_v35, %s1990_s15 }
  0xc1   : > { %749 = vrot.lane.b32.xlu2 %v2225_v31, %s1992_s17 }
  0xc8   : > { %747 = vrot.lane.b32.xlu1 %v739_v44, %s1992_s17  ;;  %416 = vrot.lane.b32.xlu0 %v408_v47, %s1995_s20 }
  0xc9   : > { %792 = vperm.xlu2 %1964, %v788_v45  }
  0xd0   : > { %753 = vrot.lane.b32.xlu1 %v2225_v31, %s1992_s17  ;;  %751 = vrot.lane.b32.xlu0 %v741_v57, %s1992_s17 }
  0xd1   : > { %1225 = vrot.lane.b32.xlu2 %v1997_v18, %s1996_s21 }
  0xd8   : > { %1191 = vrot.lane.b32.xlu1 %v2119_v28, %s1994_s19  ;;  %797 = vperm.xlu0 %1965, %v789_v3  }
  0xd9   : > { %1229 = vrot.lane.b32.xlu2 %v1997_v18, %s1996_s21 }
  0xe0   : > { %1155 = vrot.lane.b32.xlu1 %v2132_v36, %s1991_s16  ;;  %1195 = vrot.lane.b32.xlu0 %v2119_v28, %s1994_s19 }
  0xe1   : > { %1151 = vrot.lane.b32.xlu2 %v2132_v36, %s1991_s16 }
  0xe8   : > { %1265 = vrot.lane.b32.xlu0 %v2225_v31, %s1992_s17 }
  0xe9   : > { %1269 = vrot.lane.b32.xlu2 %v2225_v31, %s1992_s17 }
  0xea   : > { %v665_v18 = vpop.permute.xlu2 %664 }
  0xeb   : > { %v671_v60 = vrot.slane %v665_v18, 4 }
  0xf3   : > { %v619_v29 = vpop.permute.xlu2 %618 }
  0xf4   : > { %v623_v7 = vrot.slane %v619_v29, 4 }
  0xfb   : > { %v2283_v30 = vpop.permute.xlu2 %506 }
 0x102   : > { %v669_v33 = vpop.permute.xlu1 %668 }
 0x103   : > { %v613_v35 = vpop.permute.xlu2 %612  ;;  %v673_v61 = vrot.slane %v669_v33, 4 }
 0x104   : > { %v620_v39 = vrot.slane %v613_v35, 4 }
 0x10a   : > { %v557_v37 = vpop.permute.xlu1 %556  ;;  %v615_v38 = vpop.permute.xlu0 %614 }
 0x10b   : > { %v621_v28 = vrot.slane %v615_v38, 4  ;;  %v559_v43 = vpop.permute.xlu2 %558  ;;  %v563_v11 = vrot.slane %v557_v37, 4  ;;  %v513_v38 = vrot.slane %v2283_v30, 4 }
 0x10c   : > { %v564_v47 = vrot.slane %v559_v43, 4 }
 0x10d   : > { %v624_v40 = vsel %vm428_vm10, %v620_v39, %v621_v28 }
 0x10e   : > { %v626_v36 = vsel %vm535_vm6, %v613_v35, %v624_v40 }
 0x10f   : > { %631 = vst [vmem:[#allocation3 + $0x50] sm:$0xff] %v626_v36 }
 0x112   : > { %v511_v44 = vpop.permute.xlu1 %510  ;;  %v561_v45 = vpop.permute.xlu0 %560 }
 0x113   : > { %v565_v31 = vrot.slane %v561_v45, 4  ;;  %v421_v49 = vpop.permute.xlu2 %420  ;;  %v515_v39 = vrot.slane %v511_v44, 4 }
 0x114   : > { %v426_v52 = vrot.slane %v421_v49, 4 }
 0x115   : > { %v569_v48 = vsel %vm428_vm10, %v564_v47, %v565_v31  ;;  %v1742_v31 = vld [vmem:[#allocation3 + $0x40] sm:$0xf] }
 0x116   : > { %v570_v9 = vsel %vm567_vm4, %v559_v43, %v569_v48  ;;  %v1750_v36 = vld [vmem:[#allocation3 + $0x50] sm:$0xf]  ;;  %v1882_v43 = vld [vmem:[#allocation3 + $0x54] sm:$0xf]  ;;  %v1881_v48 = vld [vmem:[#allocation3 + $0x44] sm:$0xf0] }
 0x117   : > { %574 = vst [vmem:[#allocation3 + $0x38] sm:$0xff] %v570_v9  ;;  %v1880_v9 = vld [vmem:[#allocation3 + $0x44] sm:$0xf] }
 0x11a   : > { %v2289_v8 = vpop.permute.xlu1 %418  ;;  %v423_v51 = vpop.permute.xlu0 %422 }
 0x11b   : > { %v427_v53 = vrot.slane %v423_v51, 4 }
 0x11d   : > { %v432_v54 = vsel %vm428_vm10, %v426_v52, %v427_v53 }
 0x11e   : > { %v433_v55 = vsel %vm430_vm9, %v421_v49, %v432_v54  ;;  %v1744_v54 = vld [vmem:[#allocation3 + $0x48] sm:$0xf0] }
 0x11f   : > { %437 = vst [vmem:[#allocation3 + $0x8] sm:$0xff] %v433_v55  ;;  %v750_v55 = vpop.permute.xlu2 %749 }
 0x122   : > { %v663_v57 = vpop.permute.xlu1 %662  ;;  %v667_v59 = vpop.permute.xlu0 %666 }
 0x123   : > { %v670_v10 = vrot.slane %v663_v57, 4  ;;  %v672_v12 = vrot.slane %v667_v59, 4 }
 0x125   : > { %v674_v62 = vsel %vm428_vm10, %v670_v10, %v671_v60  ;;  %v677_v0 = vsel %vm428_vm10, %v672_v12, %v673_v61  ;;  %v425_v10 = vrot.slane %v2289_v8, 4  ;;  %v756_v12 = vrot.slane %v750_v55, 4  ;;  %v1704_v55 = vld [vmem:[%s2513_s1 + $0x8] sm:$0xf0] }
 0x126   : > { %v676_v1 = vsel %vm485_vm8, %v663_v57, %v674_v62  ;;  %v678_v2 = vsel %vm485_vm8, %v667_v59, %v677_v0  ;;  %v1743_v57 = vor.u32 %v1881_v48, %v1742_v31  ;;  %v1747_v59 = vor.u32 %v1880_v9, %v1744_v54  ;;  %v1702_v48 = vld [vmem:[%s2513_s1] sm:$0xf]  ;;  %v1871_v9 = vld [vmem:[%s2513_s1 + $0x4] sm:$0xf0] }
 0x127   : > { %681 = vst [vmem:[#allocation3 + $0x60] sm:$0xff] %v676_v1  ;;  %v1703_v54 = vor.u32 %v1871_v9, %v1702_v48 }
 0x128   : > { %682 = vst [vmem:[#allocation3 + $0x68] sm:$0xff] %v678_v2 }
 0x12a   : > { %v617_v3 = vpop.permute.xlu1 %616  ;;  %v555_v4 = vpop.permute.xlu0 %554 }
 0x12b   : > { %v622_v13 = vrot.slane %v617_v3, 4  ;;  %v562_v14 = vrot.slane %v555_v4, 4 }
 0x12d   : > { %v627_v15 = vsel %vm428_vm10, %v622_v13, %v623_v7  ;;  %v566_v17 = vsel %vm428_vm10, %v562_v14, %v563_v11  ;;  %v1879_v13 = vld [vmem:[#allocation3 + $0x34] sm:$0xf0]  ;;  %v1736_v14 = vld [vmem:[#allocation3 + $0x38] sm:$0xf0] }
 0x12e   : > { %v628_v19 = vsel %vm535_vm6, %v617_v3, %v627_v15  ;;  %v568_v20 = vsel %vm567_vm4, %v555_v4, %v566_v17  ;;  %v1758_v21 = vld [vmem:[#allocation3 + $0x60] sm:$0xf]  ;;  %v1884_v23 = vld [vmem:[#allocation3 + $0x64] sm:$0xf] }
 0x12f   : > { %632 = vst [vmem:[#allocation3 + $0x58] sm:$0xff] %v628_v19  ;;  %v1885_v24 = vld [vmem:[#allocation3 + $0x64] sm:$0xf0]  ;;  %v1760_v18 = vld [vmem:[#allocation3 + $0x68] sm:$0xf0] }
 0x130   : > { %573 = vst [vmem:[#allocation3 + $0x30] sm:$0xff] %v568_v20  ;;  %v1759_v33 = vor.u32 %v1885_v24, %v1758_v21  ;;  %v1763_v35 = vor.u32 %v1884_v23, %v1760_v18 }
 0x132   : > { %904 = vmatpush.bf16.msra.mxu0 %v1759_v33  ;;  %932 = vmatpush.bf16.msra.mxu2 %v1763_v35  ;;  %v509_v29 = vpop.permute.xlu0 %508  ;;  %v505_v37 = vpop.permute.xlu1 %504 }
 0x133   : > { %v514_v28 = vrot.slane %v509_v29, 4  ;;  %v512_v40 = vrot.slane %v505_v37, 4 }
 0x135   : > { %v519_v45 = vsel %vm428_vm10, %v514_v28, %v515_v39  ;;  %v516_v47 = vsel %vm428_vm10, %v512_v40, %v513_v38  ;;  %v1875_v38 = vld [vmem:[#allocation3 + $0x14] sm:$0xf0]  ;;  %v1874_v39 = vld [vmem:[#allocation3 + $0x14] sm:$0xf]  ;;  %v1720_v28 = vld [vmem:[#allocation3 + $0x18] sm:$0xf0] }
 0x136   : > { %v520_v49 = vsel %vm517_vm5, %v509_v29, %v519_v45  ;;  %v518_v51 = vsel %vm517_vm5, %v505_v37, %v516_v47  ;;  %v1883_v52 = vld [vmem:[#allocation3 + $0x54] sm:$0xf0]  ;;  %v1752_v53 = vld [vmem:[#allocation3 + $0x58] sm:$0xf0]  ;;  %v1718_v37 = vld [vmem:[#allocation3 + $0x10] sm:$0xf]  ;;  %v1723_v45 = vor.u32 %v1874_v39, %v1720_v28 }
 0x137   : > { %524 = vst [vmem:[#allocation3 + $0x28] sm:$0xff] %v520_v49  ;;  %v1751_v30 = vor.u32 %v1883_v52, %v1750_v36  ;;  %v1755_v44 = vor.u32 %v1882_v43, %v1752_v53  ;;  %v1734_v1 = vld [vmem:[#allocation3 + $0x30] sm:$0xf]  ;;  %v1878_v2 = vld [vmem:[#allocation3 + $0x34] sm:$0xf]  ;;  %v1719_v43 = vor.u32 %v1875_v38, %v1718_v37 }
 0x138   : > { %523 = vst [vmem:[#allocation3 + $0x20] sm:$0xff] %v518_v51  ;;  %v1735_v15 = vor.u32 %v1879_v13, %v1734_v1  ;;  %v1739_v8 = vor.u32 %v1878_v2, %v1736_v14  ;;  %v1873_v49 = vld [vmem:[#allocation3 + $0x4] sm:$0xf0]  ;;  %v1712_v51 = vld [vmem:[#allocation3 + $0x8] sm:$0xf0] }
 0x139   : > { %905 = vmatpush.bf16.msra.mxu0 %v1751_v30  ;;  %933 = vmatpush.bf16.msra.mxu2 %v1755_v44  ;;  %v1870_v44 = vld [vmem:[%s2513_s1 + $0x4] sm:$0xf] }
 0x13a   : > { %v748_v60 = vpop.permute.xlu1 %747  ;;  %v417_v61 = vpop.permute.xlu0 %416 }
 0x13b   : > { %v755_v62 = vrot.slane %v748_v60, 4  ;;  %v424_v0 = vrot.slane %v417_v61, 4 }
 0x13d   : > { %v759_v3 = vsel %vm428_vm10, %v755_v62, %v756_v12  ;;  %v429_v4 = vsel %vm428_vm10, %v424_v0, %v425_v10  ;;  %906 = vmatpush.bf16.msra.mxu0 %v1743_v57  ;;  %934 = vmatpush.bf16.msra.mxu2 %v1747_v59  ;;  %v1707_v12 = vor.u32 %v1870_v44, %v1704_v55  ;;  %v793_v62 = vpop.permute.xlu2 %792 }
 0x13e   : > { %v761_v7 = vsel %vm397_vm7, %v748_v60, %v759_v3  ;;  %v431_v11 = vsel %vm430_vm9, %v417_v61, %v429_v4  ;;  %v1877_v17 = vld [vmem:[#allocation3 + $0x24] sm:$0xf0]  ;;  %v1728_v19 = vld [vmem:[#allocation3 + $0x28] sm:$0xf0] }
 0x13f   : > { %766 = vst [vmem:[#allocation3 + $0x80] sm:$0xff] %v761_v7  ;;  %v1726_v20 = vld [vmem:[#allocation3 + $0x20] sm:$0xf]  ;;  %v1876_v21 = vld [vmem:[#allocation3 + $0x24] sm:$0xf] }
 0x140   : > { %436 = vst [vmem:[#allocation3] sm:$0xff] %v431_v11  ;;  %v1727_v35 = vor.u32 %v1877_v17, %v1726_v20  ;;  %v1731_v29 = vor.u32 %v1876_v21, %v1728_v19 }
 0x141   : > { %907 = vmatpush.bf16.msra.mxu0 %v1735_v15  ;;  %935 = vmatpush.bf16.msra.mxu2 %v1739_v8 }
 0x142   : > { %v754_v23 = vpop.permute.xlu1 %753  ;;  %v752_v24 = vpop.permute.xlu0 %751 }
 0x143   : > { %v758_v18 = vrot.slane %v754_v23, 4  ;;  %v757_v33 = vrot.slane %v752_v24, 4 }
 0x145   : > { %v762_v40 = vsel %vm428_vm10, %v757_v33, %v758_v18  ;;  %908 = vmatpush.bf16.msra.mxu0 %v1727_v35  ;;  %936 = vmatpush.bf16.msra.mxu2 %v1731_v29 }
 0x146   : > { %v763_v36 = vsel %vm397_vm7, %v752_v24, %v762_v40  ;;  %v1774_v30 = vld [vmem:[#allocation3 + $0x80] sm:$0xf]  ;;  %v1888_v59 = vld [vmem:[#allocation3 + $0x84] sm:$0xf] }
 0x147   : > { %767 = vst [vmem:[#allocation3 + $0x88] sm:$0xff] %v763_v36  ;;  %v1710_v47 = vld [vmem:[#allocation3] sm:$0xf]  ;;  %v1872_v31 = vld [vmem:[#allocation3 + $0x4] sm:$0xf] }
 0x148   : > { %v1711_v52 = vor.u32 %v1873_v49, %v1710_v47  ;;  %v1715_v53 = vor.u32 %v1872_v31, %v1712_v51 }
 0x149   : > { %909 = vmatpush.bf16.msra.mxu0 %v1719_v43  ;;  %937 = vmatpush.bf16.msra.mxu2 %v1723_v45 }
 0x14a   : > { %v798_v21 = vpop.permute.xlu0 %797 }
 0x14d   : > { %910 = vmatpush.bf16.msra.mxu0 %v1711_v52  ;;  %938 = vmatpush.bf16.msra.mxu2 %v1715_v53 }
 0x14e   : > { %v1889_v57 = vld [vmem:[#allocation3 + $0x84] sm:$0xf0]  ;;  %v1776_v60 = vld [vmem:[#allocation3 + $0x88] sm:$0xf0] }
 0x14f   : > { %v1775_v61 = vor.u32 %v1889_v57, %v1774_v30  ;;  %v1779_v10 = vor.u32 %v1888_v59, %v1776_v60 }
 0x150   : > { %911 = vmatmul.bf16.vlgmr.msra.gmra.mxu0 %v1703_v54  ;;  %939 = vmatmul.bf16.vlgmr.msra.gmra.mxu2 %v1703_v54 }
 0x151   : > { %924 = vmatpush.bf16.msra.mxu1 %v1775_v61  ;;  %952 = vmatpush.bf16.msra.mxu3 %v1779_v10 }
 0x154   : > { %1780 = vmatmul.msk.bf16.vlgmr.msra.gmra.mxu1 %vm465_vm12, %v1707_v12  ;;  %1781 = vmatmul.msk.bf16.vlgmr.msra.gmra.mxu3 %vm465_vm12, %v1707_v12 }
 0x1cd   : > { %v912_v0 = vpop.f32.mrf.mxu0 }
 0x1ce   : > { %v913_v1 = vadd.f32 %v912_v0, %v793_v62 }
 0x1d1   : > { %v926_v2 = vpop.f32.mrf.mxu1 }
 0x1d2   : > { %v927_v3 = vadd.f32 %v926_v2, %v913_v1 }
 0x1d3   : > { %v940_v4 = vpop.f32.mrf.mxu2 }
 0x1d4   : > { %v2327_v7 = vmax.f32 %v927_v3, 0.0  ;;  %v941_v11 = vadd.f32 %v940_v4, %v793_v62 }
 0x1d5   : > { %v914_v15 = vpop.f32.mrf.mxu0 }
 0x1d6   : > { %v1088_v13 = vmul.f32 %v2327_v7, %v2172_v58  ;;  %v1048_v14 = vmul.f32 %v2327_v7, %v2211_v22  ;;  %v915_v24 = vadd.f32 %v914_v15, %v798_v21  ;;  %v1249_v29 = vmul.f32 %v2217_v25, %v2327_v7 }
 0x1d7   : > { %v954_v8 = vpop.f32.mrf.mxu3  ;;  %v1175_v36 = vmul.f32 %v2160_v50, %v2327_v7  ;;  %v1135_v54 = vmul.f32 %v2145_v41, %v2327_v7  ;;  %v1013_v0 = vpack.c.bf16 %v2327_v7, %v1989_v5 }
 0x1d8   : > { %v955_v17 = vadd.f32 %v954_v8, %v941_v11  ;;  %v1093_v19 = vpack.c.bf16 %v1088_v13, %v2185_v63  ;;  %v1053_v20 = vpack.c.bf16 %v1048_v14, %v2219_v26  ;;  %v1226_v13 = vpop.permute.xlu2 %1225  ;;  %v1196_v8 = vpop.permute.xlu0 %1195 }
 0x1d9   : > { %v928_v23 = vpop.f32.mrf.mxu1 }
 0x1da   : > { %v2335_v18 = vmax.f32 %v955_v17, 0.0  ;;  %1101 = vrot.lane.b32.xlu0 %v1093_v19, %s1993_s18  ;;  %1061 = vrot.lane.b32.xlu1 %v1053_v20, %s1990_s15  ;;  %v929_v35 = vadd.f32 %v928_v23, %v915_v24  ;;  %v1192_v20 = vpop.permute.xlu1 %1191 }
 0x1db   : > { %v942_v33 = vpop.f32.mrf.mxu2 }
 0x1dc   : > { %v1250_v37 = vmul.f32 %v2335_v18, %v2229_v32  ;;  %v1176_v38 = vmul.f32 %v2335_v18, %v2168_v56  ;;  %v1125_v39 = vpack.c.bf16 %v2335_v18, %v2327_v7  ;;  %v943_v28 = vadd.f32 %v942_v33, %v798_v21 }
 0x1dd   : > { %v961_v45 = vmax.f32 %v929_v35, 0.0  ;;  %v1049_v9 = vmul.f32 %v2130_v34, %v2335_v18  ;;  %v1136_v49 = vmul.f32 %v2335_v18, %v2151_v46  ;;  %v1014_v60 = vpack.c.bf16 %v2335_v18, %v2335_v18 }
 0x1de   : > { %v1255_v40 = vpack.c.bf16 %v1250_v37, %v1249_v29  ;;  %1127 = vst [vmem:[#allocation3 + $0x40] sm:$0xff] %v1125_v39  ;;  %v1181_v31 = vpack.c.bf16 %v1176_v38, %v1175_v36  ;;  %v975_v14 = vmul.f32 %v2147_v42, %v2335_v18 }
 0x1df   : > { %v956_v43 = vpop.f32.mrf.mxu3  ;;  %v1051_v51 = vmul.f32 %v961_v45, %v2211_v22  ;;  %v1054_v53 = vpack.c.bf16 %v1049_v9, %v1049_v9  ;;  %v1141_v30 = vpack.c.bf16 %v1136_v49, %v1135_v54  ;;  %v1091_v55 = vmul.f32 %v961_v45, %v2172_v58 }
 0x1e0   : > { %v957_v47 = vadd.f32 %v956_v43, %v943_v28  ;;  %1263 = vrot.lane.b32.xlu2 %v1255_v40, %s1992_s17  ;;  %v1089_v22 = vmul.f32 %v2117_v27, %v2335_v18  ;;  %v1178_v61 = vmul.f32 %v2160_v50, %v961_v45  ;;  %v1138_v12 = vmul.f32 %v2145_v41, %v961_v45  ;;  %v1266_v19 = vpop.permute.xlu0 %1265 }
 0x1e1   : > { %v1055_v44 = vpack.c.bf16 %v1051_v51, %v2219_v26  ;;  %v1095_v57 = vpack.c.bf16 %v1091_v55, %v2185_v63  ;;  %v974_v41 = vmul.f32 %v2327_v7, %v2192_v6  ;;  %v1272_v23 = vrot.slane %v1266_v19, 4 }
 0x1e2   : > { %v962_v48 = vmax.f32 %v957_v47, 0.0  ;;  %1189 = vrot.lane.b32.xlu0 %v1181_v31, %s1994_s19  ;;  %1223 = vrot.lane.b32.xlu1 %v1125_v39, %s1996_s21  ;;  %v1094_v59 = vpack.c.bf16 %v1089_v22, %v1089_v22  ;;  %v1156_v35 = vpop.permute.xlu1 %1155  ;;  %v1232_v31 = vrot.slane %v1226_v13, 4  ;;  %v1198_v49 = vrot.slane %v1192_v20, 4 }
 0x1e3   : > { %v979_v2 = vpack.c.bf16 %v974_v41, %v2204_v16 }
 0x1e4   : > { %v1126_v52 = vpack.c.bf16 %v962_v48, %v961_v45  ;;  %v1179_v26 = vmul.f32 %v962_v48, %v2168_v56  ;;  %v1139_v58 = vmul.f32 %v962_v48, %v2151_v46  ;;  %v1092_v62 = vmul.f32 %v2117_v27, %v962_v48 }
 0x1e5   : > { %v1015_v46 = vpack.c.bf16 %v961_v45, %v1989_v5  ;;  %v1253_v56 = vmul.f32 %v962_v48, %v2229_v32  ;;  %v1016_v1 = vpack.c.bf16 %v962_v48, %v962_v48  ;;  %v1252_v27 = vmul.f32 %v2217_v25, %v961_v45 }
 0x1e6   : > { %1128 = vst [vmem:[#allocation3 + $0x48] sm:$0xff] %v1126_v52  ;;  %v1183_v10 = vpack.c.bf16 %v1179_v26, %v1178_v61  ;;  %v1143_v63 = vpack.c.bf16 %v1139_v58, %v1138_v12  ;;  %v1096_v50 = vpack.c.bf16 %v1092_v62, %v1092_v62  ;;  %v977_v5 = vmul.f32 %v961_v45, %v2192_v6  ;;  %v1303_v6 = vld [vmem:[%s2516_s4] sm:$0xff] }
 0x1e7   : > { %v1257_v3 = vpack.c.bf16 %v1253_v56, %v1252_v27  ;;  %v978_v4 = vmul.f32 %v2147_v42, %v962_v48  ;;  %v1052_v7 = vmul.f32 %v2130_v34, %v962_v48  ;;  %v980_v34 = vpack.c.bf16 %v975_v14, %v975_v14 }
 0x1e8   : > { %1063 = vrot.lane.b32.xlu2 %v1054_v53, %s1990_s15  ;;  %v981_v32 = vpack.c.bf16 %v977_v5, %v2204_v16  ;;  %v2407_v16 = vpop.permute.xlu2 %1229  ;;  %v1200_v45 = vrot.slane %v1196_v8, 4 }
 0x1e9   : > { %v982_v25 = vpack.c.bf16 %v978_v4, %v978_v4  ;;  %v1056_v11 = vpack.c.bf16 %v1052_v7, %v1052_v7  ;;  %v1234_v5 = vrot.slane %v2407_v16, 4  ;;  %v1160_v4 = vrot.slane %v1156_v35, 4 }
 0x1ea   : > { %1149 = vrot.lane.b32.xlu1 %v1141_v30, %s1991_s16  ;;  %1065 = vrot.lane.b32.xlu0 %v1055_v44, %s1990_s15 }
 0x1f0   : > { %1105 = vrot.lane.b32.xlu2 %v1095_v57, %s1993_s18  ;;  %v1152_v15 = vpop.permute.xlu2 %1151 }
 0x1f2   : > { %1103 = vrot.lane.b32.xlu1 %v1094_v59, %s1993_s18  ;;  %1023 = vrot.lane.b32.xlu0 %v1014_v60, %s1998_s22  ;;  %v1158_v60 = vrot.slane %v1152_v15, 4 }
 0x1f8   : > { %1193 = vrot.lane.b32.xlu2 %v1183_v10, %s1994_s19  ;;  %v2409_v17 = vpop.permute.xlu2 %1269  ;;  %s2001_s19 = smov 2  }
 0x1fa   : > { %1227 = vrot.lane.b32.xlu1 %v1126_v52, %s1996_s21  ;;  %1153 = vrot.lane.b32.xlu0 %v1143_v63, %s1991_s16 }
 0x200   : > { %1021 = vrot.lane.b32.xlu2 %v1013_v0, %s1998_s22 }
 0x202   : > { %1107 = vrot.lane.b32.xlu0 %v1096_v50, %s1993_s18  ;;  %1025 = vrot.lane.b32.xlu1 %v1015_v46, %s1998_s22 }
 0x208   : > { %1027 = vrot.lane.b32.xlu2 %v1016_v1, %s1998_s22 }
 0x20a   : > { %987 = vrot.lane.b32.xlu0 %v979_v2, %s1995_s20  ;;  %1267 = vrot.lane.b32.xlu1 %v1257_v3, %s1992_s17 }
 0x210   : > { %991 = vrot.lane.b32.xlu2 %v981_v32, %s1995_s20 }
 0x212   : > { %993 = vrot.lane.b32.xlu0 %v982_v25, %s1995_s20  ;;  %1067 = vrot.lane.b32.xlu1 %v1056_v11, %s1990_s15  ;;  %s2002_s15 = smov 3  }
 0x218   : > { %1307 = vperm.xlu2 %1964, %v1303_v6  }
 0x21a   : > { %989 = vrot.lane.b32.xlu1 %v980_v34, %s1995_s20 }
 0x23a   : > { %v1264_v21 = vpop.permute.xlu2 %1263 }
 0x23b   : > { %v1271_v24 = vrot.slane %v1264_v21, 4 }
 0x23d   : > { %v1275_v42 = vsel %vm428_vm10, %v1271_v24, %v1272_v23 }
 0x23e   : > { %v1276_v18 = vsel %vm397_vm7, %v1264_v21, %v1275_v42 }
 0x23f   : > { %1281 = vst [vmem:[#allocation3 + $0x80] sm:$0xff] %v1276_v18 }
 0x242   : > { %v1064_v33 = vpop.permute.xlu2 %1063 }
 0x243   : > { %v1070_v39 = vrot.slane %v1064_v33, 4 }
 0x24a   : > { %v2413_v29 = vpop.permute.xlu2 %1105 }
 0x24b   : > { %v1111_v8 = vrot.slane %v2413_v29, 4 }
 0x24c   : > { %v1062_v37 = vpop.permute.xlu1 %1061  ;;  %v1102_v38 = vpop.permute.xlu0 %1101 }
 0x24d   : > { %v1069_v28 = vrot.slane %v1062_v37, 4  ;;  %v1109_v62 = vrot.slane %v1102_v38, 4 }
 0x24f   : > { %v1073_v40 = vsel %vm428_vm10, %v1069_v28, %v1070_v39 }
 0x250   : > { %v1074_v36 = vsel %vm517_vm5, %v1062_v37, %v1073_v40  ;;  %v1274_v40 = vrot.slane %v2409_v17, 4 }
 0x251   : > { %1079 = vst [vmem:[#allocation3 + $0x20] sm:$0xff] %v1074_v36 }
 0x252   : > { %v1194_v43 = vpop.permute.xlu2 %1193 }
 0x253   : > { %v1199_v47 = vrot.slane %v1194_v43, 4 }
 0x254   : > { %v1224_v48 = vpop.permute.xlu1 %1223  ;;  %v1190_v9 = vpop.permute.xlu0 %1189 }
 0x255   : > { %v1203_v51 = vsel %vm428_vm10, %v1199_v47, %v1200_v45  ;;  %v1231_v52 = vrot.slane %v1224_v48, 4  ;;  %v1197_v53 = vrot.slane %v1190_v9, 4 }
 0x256   : > { %v1204_v54 = vsel %vm485_vm8, %v1194_v43, %v1203_v51  ;;  %v1824_v51 = vld [vmem:[#allocation3 + $0x40] sm:$0xf] }
 0x257   : > { %1208 = vst [vmem:[#allocation3 + $0x68] sm:$0xff] %v1204_v54  ;;  %v1235_v30 = vsel %vm428_vm10, %v1231_v52, %v1232_v31  ;;  %v1201_v44 = vsel %vm428_vm10, %v1197_v53, %v1198_v49 }
 0x258   : > { %v1236_v55 = vsel %vm710_vm11, %v1224_v48, %v1235_v30  ;;  %v1202_v22 = vsel %vm485_vm8, %v1190_v9, %v1201_v44  ;;  %v1901_v9 = vld [vmem:[#allocation3 + $0x44] sm:$0xf0] }
 0x259   : > { %1241 = vst [vmem:[#allocation3 + $0x70] sm:$0xff] %v1236_v55  ;;  %v1825_v54 = vor.u32 %v1901_v9, %v1824_v51 }
 0x25a   : > { %1207 = vst [vmem:[#allocation3 + $0x60] sm:$0xff] %v1202_v22  ;;  %v1022_v10 = vpop.permute.xlu2 %1021 }
 0x25b   : > { %v1029_v0 = vrot.slane %v1022_v10, 4 }
 0x25c   : > { %v1150_v57 = vpop.permute.xlu1 %1149  ;;  %v2423_v59 = vpop.permute.xlu0 %1065 }
 0x25d   : > { %v1157_v26 = vrot.slane %v1150_v57, 4  ;;  %v1071_v17 = vrot.slane %v2423_v59, 4 }
 0x25e   : > { %v1905_v28 = vld [vmem:[#allocation3 + $0x64] sm:$0xf0] }
 0x25f   : > { %v1161_v61 = vsel %vm428_vm10, %v1157_v26, %v1158_v60  ;;  %v1908_v60 = vld [vmem:[#allocation3 + $0x84] sm:$0xf] }
 0x260   : > { %v1162_v58 = vsel %vm535_vm6, %v1150_v57, %v1161_v61  ;;  %v1848_v18 = vld [vmem:[#allocation3 + $0x70] sm:$0xf]  ;;  %v1856_v57 = vld [vmem:[#allocation3 + $0x80] sm:$0xf] }
 0x261   : > { %1167 = vst [vmem:[#allocation3 + $0x50] sm:$0xff] %v1162_v58  ;;  %v1840_v37 = vld [vmem:[#allocation3 + $0x60] sm:$0xf] }
 0x262   : > { %v1028_v6 = vpop.permute.xlu2 %1027  ;;  %v1841_v43 = vor.u32 %v1905_v28, %v1840_v37  ;;  %v1891_v37 = vld [vmem:[%s2515_s3 + $0x4] sm:$0xf0] }
 0x263   : > { %v1032_v19 = vrot.slane %v1028_v6, 4 }
 0x264   : > { %v1104_v12 = vpop.permute.xlu1 %1103  ;;  %v1024_v63 = vpop.permute.xlu0 %1023 }
 0x265   : > { %v1110_v50 = vrot.slane %v1104_v12, 4  ;;  %v1030_v46 = vrot.slane %v1024_v63, 4  ;;  %v1786_v12 = vld [vmem:[%s2515_s3 + $0x8] sm:$0xf0] }
 0x267   : > { %v1113_v41 = vsel %vm428_vm10, %v1109_v62, %v1110_v50  ;;  %v1033_v56 = vsel %vm428_vm10, %v1029_v0, %v1030_v46 }
 0x268   : > { %v1114_v1 = vsel %vm567_vm4, %v1102_v38, %v1113_v41  ;;  %v1034_v27 = vsel %vm465_vm12, %v1022_v10, %v1033_v56  ;;  %v1832_v31 = vld [vmem:[#allocation3 + $0x50] sm:$0xf]  ;;  %v1890_v10 = vld [vmem:[%s2515_s3 + $0x4] sm:$0xf] }
 0x269   : > { %1119 = vst [vmem:[#allocation3 + $0x30] sm:$0xff] %v1114_v1 }
 0x26a   : > { %1039 = vst [vmem:[#allocation3 + $0x10] sm:$0xff] %v1034_v27  ;;  %v992_v49 = vpop.permute.xlu2 %991  ;;  %v1906_v27 = vld [vmem:[#allocation3 + $0x74] sm:$0xf] }
 0x26b   : > { %v997_v30 = vrot.slane %v992_v49, 4 }
 0x26c   : > { %v1228_v2 = vpop.permute.xlu1 %1227  ;;  %v1154_v3 = vpop.permute.xlu0 %1153 }
 0x26d   : > { %v1233_v7 = vrot.slane %v1228_v2, 4  ;;  %v1159_v32 = vrot.slane %v1154_v3, 4 }
 0x26f   : > { %v1237_v25 = vsel %vm428_vm10, %v1233_v7, %v1234_v5  ;;  %v1163_v11 = vsel %vm428_vm10, %v1159_v32, %v1160_v4  ;;  %v1904_v5 = vld [vmem:[#allocation3 + $0x64] sm:$0xf] }
 0x270   : > { %v1238_v13 = vsel %vm710_vm11, %v1228_v2, %v1237_v25  ;;  %v1164_v14 = vsel %vm535_vm6, %v1154_v3, %v1163_v11  ;;  %v1816_v0 = vld [vmem:[#allocation3 + $0x30] sm:$0xf]  ;;  %v1789_v3 = vor.u32 %v1890_v10, %v1786_v12  ;;  %v1842_v25 = vld [vmem:[#allocation3 + $0x68] sm:$0xf0] }
 0x271   : > { %1242 = vst [vmem:[#allocation3 + $0x78] sm:$0xff] %v1238_v13  ;;  %v1845_v11 = vor.u32 %v1904_v5, %v1842_v25 }
 0x272   : > { %1168 = vst [vmem:[#allocation3 + $0x58] sm:$0xff] %v1164_v14 }
 0x274   : > { %v1026_v34 = vpop.permute.xlu1 %1025  ;;  %v1108_v15 = vpop.permute.xlu0 %1107 }
 0x275   : > { %v1031_v16 = vrot.slane %v1026_v34, 4  ;;  %v1112_v20 = vrot.slane %v1108_v15, 4 }
 0x277   : > { %v1035_v21 = vsel %vm428_vm10, %v1031_v16, %v1032_v19  ;;  %v1115_v23 = vsel %vm428_vm10, %v1111_v8, %v1112_v20  ;;  %v1902_v19 = vld [vmem:[#allocation3 + $0x54] sm:$0xf] }
 0x278   : > { %v1036_v24 = vsel %vm465_vm12, %v1026_v34, %v1035_v21  ;;  %v1116_v42 = vsel %vm567_vm4, %v2413_v29, %v1115_v23  ;;  %v1907_v33 = vld [vmem:[#allocation3 + $0x74] sm:$0xf0]  ;;  %v1850_v58 = vld [vmem:[#allocation3 + $0x78] sm:$0xf0]  ;;  %v1808_v34 = vld [vmem:[#allocation3 + $0x20] sm:$0xf] }
 0x279   : > { %1040 = vst [vmem:[#allocation3 + $0x18] sm:$0xff] %v1036_v24  ;;  %v1849_v35 = vor.u32 %v1907_v33, %v1848_v18  ;;  %v1903_v45 = vld [vmem:[#allocation3 + $0x54] sm:$0xf0]  ;;  %v1853_v2 = vor.u32 %v1906_v27, %v1850_v58  ;;  %v1834_v14 = vld [vmem:[#allocation3 + $0x58] sm:$0xf0] }
 0x27a   : > { %1120 = vst [vmem:[#allocation3 + $0x38] sm:$0xff] %v1116_v42  ;;  %v1833_v48 = vor.u32 %v1903_v45, %v1832_v31  ;;  %v1837_v16 = vor.u32 %v1902_v19, %v1834_v14  ;;  %v1826_v21 = vld [vmem:[#allocation3 + $0x48] sm:$0xf0]  ;;  %v1800_v23 = vld [vmem:[#allocation3 + $0x10] sm:$0xf] }
 0x27b   : > { %1417 = vmatpush.bf16.msrb.mxu1 %v1849_v35  ;;  %v1900_v42 = vld [vmem:[#allocation3 + $0x44] sm:$0xf]  ;;  %v1784_v35 = vld [vmem:[%s2515_s3] sm:$0xf] }
 0x27c   : > { %v1268_v38 = vpop.permute.xlu1 %1267  ;;  %v988_v39 = vpop.permute.xlu0 %987  ;;  %v1829_v18 = vor.u32 %v1900_v42, %v1826_v21  ;;  %v1539_v14 = vld [vmem:[%s2518_s6] sm:$0xf] }
 0x27d   : > { %v1273_v36 = vrot.slane %v1268_v38, 4  ;;  %v995_v7 = vrot.slane %v988_v39, 4  ;;  %v1542_v21 = vld [vmem:[%s2519_s7] sm:$0xff] }
 0x27f   : > { %v1277_v47 = vsel %vm428_vm10, %v1273_v36, %v1274_v40  ;;  %1418 = vmatpush.bf16.msrb.mxu1 %v1841_v43  ;;  %v1898_v40 = vld [vmem:[#allocation3 + $0x34] sm:$0xf]  ;;  %v1785_v43 = vor.u32 %v1891_v37, %v1784_v35 }
 0x280   : > { %v1278_v29 = vsel %vm397_vm7, %v1268_v38, %v1277_v47  ;;  %v1895_v20 = vld [vmem:[#allocation3 + $0x14] sm:$0xf0]  ;;  %v1896_v47 = vld [vmem:[#allocation3 + $0x24] sm:$0xf]  ;;  %v1802_v31 = vld [vmem:[#allocation3 + $0x18] sm:$0xf0] }
 0x281   : > { %1282 = vst [vmem:[#allocation3 + $0x88] sm:$0xff] %v1278_v29  ;;  %v1899_v22 = vld [vmem:[#allocation3 + $0x34] sm:$0xf0]  ;;  %v1801_v24 = vor.u32 %v1895_v20, %v1800_v23  ;;  %v1818_v33 = vld [vmem:[#allocation3 + $0x38] sm:$0xf0]  ;;  %v1543_v23 = vld [vmem:[%s2519_s7 + $0x8] sm:$0xff] }
 0x282   : > { %v1817_v41 = vor.u32 %v1899_v22, %v1816_v0  ;;  %v1821_v36 = vor.u32 %v1898_v40, %v1818_v33 }
 0x283   : > { %1419 = vmatpush.bf16.msrb.mxu1 %v1833_v48  ;;  %v1894_v48 = vld [vmem:[#allocation3 + $0x14] sm:$0xf] }
 0x284   : > { %v1068_v52 = vpop.permute.xlu1 %1067  ;;  %v994_v53 = vpop.permute.xlu0 %993  ;;  %v1805_v9 = vor.u32 %v1894_v48, %v1802_v31 }
 0x285   : > { %v1072_v44 = vrot.slane %v1068_v52, 4  ;;  %v998_v55 = vrot.slane %v994_v53, 4 }
 0x287   : > { %v1075_v26 = vsel %vm428_vm10, %v1071_v17, %v1072_v44  ;;  %v1001_v61 = vsel %vm428_vm10, %v997_v30, %v998_v55  ;;  %1420 = vmatpush.bf16.msrb.mxu1 %v1825_v54  ;;  %v1308_v30 = vpop.permute.xlu2 %1307 }
 0x288   : > { %v1076_v63 = vsel %vm517_vm5, %v2423_v59, %v1075_v26  ;;  %v1002_v62 = vsel %vm430_vm9, %v992_v49, %v1001_v61  ;;  %v1909_v50 = vld [vmem:[#allocation3 + $0x84] sm:$0xf0]  ;;  %v1858_v46 = vld [vmem:[#allocation3 + $0x88] sm:$0xf0]  ;;  %v1488_v61 = vld [vmem:[%s2517_s5] sm:$0xf] }
 0x289   : > { %1080 = vst [vmem:[#allocation3 + $0x28] sm:$0xff] %v1076_v63  ;;  %v1857_v56 = vor.u32 %v1909_v50, %v1856_v57  ;;  %v1861_v1 = vor.u32 %v1908_v60, %v1858_v46  ;;  %v1304_v59 = vld [vmem:[%s2516_s4 + $0x8] sm:$0xff] }
 0x28a   : > { %1006 = vst [vmem:[#allocation3 + $0x8] sm:$0xff] %v1002_v62  ;;  %1312 = vperm.xlu1 %1966, %v1304_v59   ;;  %v2000_v59 = vmov 256.0  }
 0x28b   : > { %1421 = vmatpush.bf16.msrb.mxu1 %v1817_v41  ;;  %1438 = vmatpush.bf16.msrb.mxu3 %v1857_v56  ;;  %1967 = vrcp.f32 %v2000_v59  ;;  %v1978_v59 = vld [vmem:[%s2072_s14 + $0x8] sm:$0xff] }
 0x28c   : > { %1466 = vmatpush.bf16.msrb.mxu0 %v1861_v1  ;;  %v990_v4 = vpop.permute.xlu1 %989 }
 0x28d   : > { %v996_v32 = vrot.slane %v990_v4, 4 }
 0x28e   : > { %1862 = vmatmul.msk.bf16.vlgmr.msrb.gmra.mxu3 %vm465_vm12, %v1789_v3 }
 0x28f   : > { %1445 = vmatpush.bf16.msra.mxu3 %v1853_v2  ;;  %v999_v13 = vsel %vm428_vm10, %v995_v7, %v996_v32  ;;  %1863 = vmatmul.msk.bf16.vlgmr.msrb.gmra.mxu0 %vm465_vm12, %v1789_v3 }
 0x290   : > { %v1000_v6 = vsel %vm430_vm9, %v988_v39, %v999_v13  ;;  %v1897_v15 = vld [vmem:[#allocation3 + $0x24] sm:$0xf0]  ;;  %v1810_v45 = vld [vmem:[#allocation3 + $0x28] sm:$0xf0] }
 0x291   : > { %1005 = vst [vmem:[#allocation3] sm:$0xff] %v1000_v6  ;;  %v1809_v8 = vor.u32 %v1897_v15, %v1808_v34  ;;  %v1893_v39 = vld [vmem:[#allocation3 + $0x4] sm:$0xf0]  ;;  %v1813_v29 = vor.u32 %v1896_v47, %v1810_v45  ;;  %v1794_v51 = vld [vmem:[#allocation3 + $0x8] sm:$0xf0]  ;;  %v1968_v4 = vpop.eup %1967 }
 0x292   : > { %v1480_v7 = vmul.f32 256.0, %v1968_v4  ;;  %vm1484_vm13 = vweird.f32 %v1968_v4 }
 0x293   : > { %1446 = vmatpush.bf16.msra.mxu3 %v1845_v11  ;;  %1422 = vmatpush.bf16.msrb.mxu1 %v1809_v8 }
 0x294   : > { %v1481_v32 = vsub.f32 1.0, %v1480_v7 }
 0x296   : > { %v1482_v25 = vmul.f32 %v1968_v4, %v1481_v32  ;;  %v1979_v32 = vld [vmem:[%s2072_s14 + $0x10] sm:$0xff] }
 0x297   : > { %1447 = vmatpush.bf16.msra.mxu3 %v1837_v16  ;;  %1423 = vmatpush.bf16.msrb.mxu1 %v1801_v24 }
 0x298   : > { %v1792_v38 = vld [vmem:[#allocation3] sm:$0xf]  ;;  %v1892_v49 = vld [vmem:[#allocation3 + $0x4] sm:$0xf]  ;;  %v1483_v11 = vadd.f32 %v1968_v4, %v1482_v25 }
 0x299   : > { %v1793_v28 = vor.u32 %v1893_v39, %v1792_v38  ;;  %v1797_v52 = vor.u32 %v1892_v49, %v1794_v51 }
 0x29a   : > { %v2477_v13 = vsel %vm1484_vm13, %v1968_v4, %v1483_v11  ;;  %v1980_v11 = vld [vmem:[%s2072_s14 + $0x18] sm:$0xff] }
 0x29b   : > { %1448 = vmatpush.bf16.msra.mxu3 %v1829_v18  ;;  %1424 = vmatpush.bf16.msrb.mxu1 %v1793_v28 }
 0x29e   : > { %1425 = vmatmul.bf16.vlgmr.msrb.gmra.mxu1 %v1785_v43 }
 0x29f   : > { %1449 = vmatpush.bf16.msra.mxu3 %v1821_v36 }
 0x2a3   : > { %1450 = vmatpush.bf16.msra.mxu3 %v1813_v29  ;;  %v1544_v29 = vld [vmem:[%s2520_s8] sm:$0xff] }
 0x2a7   : > { %1451 = vmatpush.bf16.msra.mxu3 %v1805_v9 }
 0x2ab   : > { %1452 = vmatpush.bf16.msra.mxu3 %v1797_v52 }
 0x2ae   : > { %1453 = vmatmul.bf16.vlgmr.msra.gmra.mxu3 %v1785_v43 }
 0x2fc   : > { %v1313_v17 = vpop.permute.xlu1 %1312 }
 0x30c   : > { %v1468_v58 = vpop.f32.mrf.mxu0 }
 0x311   : > { %v1440_v53 = vpop.f32.mrf.mxu3 }
 0x314   : > { %v1470_v46 = vpop.f32.mrf.mxu0 }
 0x319   : > { %v1442_v57 = vpop.f32.mrf.mxu3 }
 0x31b   : > { %v1426_v54 = vpop.f32.mrf.mxu1 }
 0x31c   : > { %v1427_v55 = vadd.f32 %v1426_v54, %v1308_v30 }
 0x31e   : > { %v1441_v26 = vadd.f32 %v1440_v53, %v1427_v55  ;;  %v1545_v53 = vld [vmem:[%s2520_s8 + $0x8] sm:$0xff] }
 0x323   : > { %v1428_v44 = vpop.f32.mrf.mxu1 }
 0x324   : > { %v1429_v22 = vadd.f32 %v1428_v44, %v1313_v17 }
 0x326   : > { %v1443_v60 = vadd.f32 %v1442_v57, %v1429_v22 }
 0x328   : > { %1506 = vmatpush.msrb.mxu2 %v1443_v60 }
 0x32a   : > { %1507 = vmatpush.msrb.mxu2 %v1441_v26 }
 0x32b   : > { %1864 = vmatmul.msk.f32.vlgmr.msrb.gmra.mxu2 %vm465_vm12, %v1488_v61 }
 0x331   : > { %v1454_v10 = vpop.f32.mrf.mxu3 }
 0x332   : > { %v1455_v12 = vadd.f32 %v1454_v10, %v1308_v30 }
 0x334   : > { %v1469_v63 = vadd.f32 %v1468_v58, %v1455_v12 }
 0x336   : > { %v1473_v62 = vadd.f32 %v1469_v63, %v1441_v26 }
 0x339   : > { %v1456_v0 = vpop.f32.mrf.mxu3 }
 0x33a   : > { %v1457_v50 = vadd.f32 %v1456_v0, %v1313_v17 }
 0x33c   : > { %v1471_v41 = vadd.f32 %v1470_v46, %v1457_v50 }
 0x33e   : > { %1526 = vmatpush.msra.mxu1 %v1471_v41  ;;  %v1476_v56 = vadd.f32 %v1471_v41, %v1443_v60 }
 0x340   : > { %1527 = vmatpush.msra.mxu1 %v1469_v63 }
 0x341   : > { %1865 = vmatmul.msk.f32.vlgmr.msra.gmra.mxu1 %vm465_vm12, %v1488_v61 }
 0x3ae   : > { %v1509_v1 = vpop.f32.mrf.mxu2 }
 0x3af   : > { %v1533_v27 = vsel %vm428_vm10, %v1509_v1, 0.0 }
 0x3be   : > { %v1529_v2 = vpop.f32.mrf.mxu1 }
 0x3bf   : > { %v1534_v3 = vsel %vm428_vm10, %v1529_v2, 0.0 }
 0x3c0   : > { %v1535_v5 = vadd.f32 %v1534_v3, %v1533_v27  ;;  %v1977_v3 = vld [vmem:[%s2072_s14] sm:$0xff] }
 0x3c2   : > { %1536 = vadd.xlane.f32.xlu0 %v1535_v5 }
 0x435   : > { %v1537_v6 = vpop.xlane.xlu0 %1536 }
 0x436   : > { %v1538_v34 = vmul.f32 %v1537_v6, %v2477_v13 }
 0x438   : > { %v1540_v15 = vadd.f32 %v1539_v14, %v1538_v34 }
 0x43a   : > { %v1541_v8 = vmax.f32 %v1540_v15, 0.0 }
 0x43c   : > { %v1551_v19 = vperm.slane %v1541_v8, 1  ;;  %v1568_v16 = vperm.slane %v1541_v8, 2  ;;  %v1585_v20 = vperm.slane %v1541_v8, 3  ;;  %v1546_v43 = vperm.slane %v1541_v8, 0 }
 0x43e   : > { %1553 = vrot.lane.b32.xlu1 %v1551_v19, %s1993_s18  ;;  %1570 = vrot.lane.b32.xlu2 %v1568_v16, %s2001_s19  ;;  %s2003_s18 = smov 126   ;;  %v1547_v47 = vmul.f32 %v1546_v43, %v1542_v21  ;;  %v1548_v52 = vmul.f32 %v1546_v43, %v1543_v23 }
 0x440   : > { %v1549_v31 = vadd.f32 %v1547_v47, %v1544_v29  ;;  %v1550_v17 = vadd.f32 %v1548_v52, %v1545_v53 }
 0x446   : > { %1587 = vrot.lane.b32.xlu1 %v1585_v20, %s2002_s15 }
 0x498   : > { %v1571_v33 = vpop.permute.xlu2 %1570 }
 0x499   : > { %v1573_v35 = vmul.f32 %v1571_v33, %v1542_v21  ;;  %v1574_v37 = vmul.f32 %v1571_v33, %v1543_v23 }
 0x4b0   : > { %v1554_v24 = vpop.permute.xlu1 %1553 }
 0x4b1   : > { %v1556_v42 = vmul.f32 %v1554_v24, %v1542_v21  ;;  %v1557_v18 = vmul.f32 %v1554_v24, %v1543_v23 }
 0x4b3   : > { %1562 = vrot.lane.b32.xlu1 %v1557_v18, %s1991_s16  ;;  %1560 = vrot.lane.b32.xlu2 %v1556_v42, %s1991_s16 }
 0x4b8   : > { %v1588_v38 = vpop.permute.xlu1 %1587 }
 0x4b9   : > { %v1590_v39 = vmul.f32 %v1588_v38, %v1542_v21  ;;  %v1591_v28 = vmul.f32 %v1588_v38, %v1543_v23 }
 0x4bb   : > { %1579 = vrot.lane.b32.xlu1 %v1574_v37, %s2003_s18  ;;  %1577 = vrot.lane.b32.xlu2 %v1573_v35, %s2003_s18 }
 0x4c3   : > { %1596 = vrot.lane.b32.xlu1 %v1591_v28, %s2004_s27  ;;  %1594 = vrot.lane.b32.xlu2 %v1590_v39, %s2004_s27 }
 0x4ec   : > { %1474 = vadd.xlane.f32.xlu2 %v1473_v62 }
 0x4ed   : > { %1477 = vadd.xlane.f32.xlu1 %v1476_v56 }
 0x50d   : > { %v1561_v40 = vpop.permute.xlu2 %1560 }
 0x50e   : > { %v1566_v9 = vadd.f32 %v1561_v40, %v1549_v31 }
 0x515   : > { %v1578_v45 = vpop.permute.xlu2 %1577 }
 0x516   : > { %v1583_v51 = vadd.f32 %v1578_v45, %v1566_v9 }
 0x51d   : > { %v1595_v49 = vpop.permute.xlu2 %1594 }
 0x51e   : > { %v1600_v54 = vadd.f32 %v1595_v49, %v1583_v51 }
 0x520   : > { %v1602_v30 = vsub.f32 0.0, %v1600_v54 }
 0x522   : > { %v1604_v57 = vmul.f32 1.442695, %v1602_v30 }
 0x524   : > { %1969 = vpow2.f32 %v1604_v57 }
 0x525   : > { %v1563_v36 = vpop.permute.xlu1 %1562 }
 0x526   : > { %v1567_v44 = vadd.f32 %v1563_v36, %v1550_v17 }
 0x52a   : > { %v1970_v58 = vpop.eup %1969 }
 0x52b   : > { %v1608_v10 = vadd.f32 1.0, %v1970_v58 }
 0x52d   : > { %v1580_v48 = vpop.permute.xlu1 %1579 }
 0x52e   : > { %v1584_v22 = vadd.f32 %v1580_v48, %v1567_v44 }
 0x535   : > { %v1597_v55 = vpop.permute.xlu1 %1596 }
 0x536   : > { %v1601_v60 = vadd.f32 %v1597_v55, %v1584_v22 }
 0x538   : > { %v1603_v26 = vsub.f32 0.0, %v1601_v60 }
 0x53a   : > { %v1606_v61 = vmul.f32 1.442695, %v1603_v26 }
 0x53c   : > { %1971 = vpow2.f32 %v1606_v61 }
 0x53d   : > { %1973 = vrcp.f32 %v1608_v10 }
 0x542   : > { %v1972_v12 = vpop.eup %1971 }
 0x543   : > { %v1609_v63 = vadd.f32 1.0, %v1972_v12  ;;  %v1974_v50 = vpop.eup %1973 }
 0x545   : > { %1975 = vrcp.f32 %v1609_v63 }
 0x54b   : > { %v1976_v1 = vpop.eup %1975 }
 0x55f   : > { %v1475_v62 = vpop.xlane.xlu2 %1474 }
 0x560   : > { %v1486_v0 = vmul.f32 %v2477_v13, %v1475_v62  ;;  %v1478_v41 = vpop.xlane.xlu1 %1477 }
 0x561   : > { %v1487_v56 = vmul.f32 %v2477_v13, %v1478_v41 }
 0x562   : > { %v1612_v46 = vmul.f32 %v1974_v50, %v1486_v0 }
 0x563   : > { %v1613_v27 = vmul.f32 %v1976_v1, %v1487_v56 }
 0x564   : > { %1616 = vperm.xlu0 %1965, %v1612_v46  }
 0x56c   : > { %1621 = vperm.xlu0 %1965, %v1613_v27  }
 0x5d6   : > { %v1617_v2 = vpop.permute.xlu0 %1616 }
 0x5d7   : > { %v1624_v5 = vadd.f32 %v1977_v3, %v1617_v2  ;;  %v1625_v4 = vadd.f32 %v1978_v59, %v1617_v2 }
 0x5d9   : > { %1628 = vst [vmem:[%s332_s24] sm:$0xff] %v1624_v5 }
 0x5da   : > { %1629 = vst [vmem:[%s332_s24 + $0x8] sm:$0xff] %v1625_v4 }
 0x5de   : > { %v1622_v7 = vpop.permute.xlu0 %1621 }
 0x5df   : > { %v1626_v25 = vadd.f32 %v1979_v32, %v1622_v7  ;;  %v1627_v13 = vadd.f32 %v1980_v11, %v1622_v7 }
 0x5e1   : > { %1630 = vst [vmem:[%s332_s24 + $0x10] sm:$0xff] %v1626_v25 }
 0x5e2   : > { %1631 = vst [vmem:[%s332_s24 + $0x18] sm:$0xff] %v1627_v13 }
 0x5e3 PF: > { %s19_s30 = sadd.s32 1, %s1987_s30  }
 0x5e4   : > { %p16_p4 = scmp.ge.s32.totalorder %s19_s30, 4  }
 0x5e6   :  { %18 = sbr.rel (!%p16_p4) target bundleno = 1 (0x1), region = 86 }

</bundles_post_ra>
